<compile_context>
chip_gen: v7x
topology: tpu7x:2x2x1
jax: 0.10.0
libtpu: 0.0.40
codegen_flags: <defaults>
</compile_context>

<pallas_src>
import jax
import jax.numpy as jnp
from jax.experimental import pallas as pl
from jax.experimental.pallas import tpu as pltpu


# ---------------------------------------------------------------------------
# Fused kernel
# ---------------------------------------------------------------------------

def _causal_conv(h, w, b, dilation, L, use_past):
    """Causal dilated conv1d (kernel_size=2) on batch-flattened (N*L, Cin) rows.

    Row r = n*L + t.  out[r] = h[r-d] @ W_past + h[r] @ W_cur + b, past tap zeroed
    for t < d (left padding + Chomp).  Both taps are fused into a single matmul
    against w = [[W_past], [W_cur]] of shape (2*Cin, Cout).  When d >= L the past
    tap is identically zero and is skipped statically (w is then just W_cur).
    """
    M, _ = h.shape
    if not use_past:
        return jnp.dot(h, w, preferred_element_type=jnp.float32) + b
    rolled = pltpu.roll(h, dilation, 0)                        # rolled[r] = h[(r - d) mod M]
    t = jax.lax.broadcasted_iota(jnp.int32, (M, 1), 0) % L     # time index within sequence
    h_prev = jnp.where(t >= dilation, rolled, 0.0)             # zero wrapped / cross-seq rows
    h_cat = jnp.concatenate([h_prev, h], axis=-1)              # (M, 2*Cin)
    return jnp.dot(h_cat, w, preferred_element_type=jnp.float32) + b


def _make_fused_kernel(meta, L):
    """meta: tuple of (dilation, has_downsample, use_past) per temporal block."""

    def kernel(*refs):
        out_ref = refs[-1]
        h = refs[0][...]                                       # (N*L, Cin0)
        idx = 1
        for dilation, has_ds, use_past in meta:
            w1 = refs[idx][...]; b1 = refs[idx + 1][...]
            w2 = refs[idx + 2][...]; b2 = refs[idx + 3][...]
            idx += 4
            x_in = h
            a = jnp.maximum(_causal_conv(x_in, w1, b1, dilation, L, use_past), 0.0)
            a = jnp.maximum(_causal_conv(a, w2, b2, dilation, L, use_past), 0.0)
            if has_ds:
                wd = refs[idx][...]; bd = refs[idx + 1][...]
                idx += 2
                res = jnp.dot(x_in, wd, preferred_element_type=jnp.float32) + bd
            else:
                res = x_in
            h = jnp.maximum(a + res, 0.0)                      # ReLU(out + residual)

        gamma = refs[idx][...]; beta = refs[idx + 1][...]
        s_full = refs[idx + 2][...]                            # (N*L, 64) per-(t, c) linear weight
        r_mat = refs[idx + 3][...]                             # (N, N*L)  per-sequence row sum
        g_mat = refs[idx + 4][...]                             # (64, L)   channel-group sum
        lin_b = refs[idx + 5][...]                             # (1, 1)

        # BatchNorm1d: training-mode batch statistics, biased variance; then ReLU.
        mean = jnp.mean(h, axis=0, keepdims=True)
        var = jnp.mean((h - mean) ** 2, axis=0, keepdims=True)
        h = (h - mean) * jax.lax.rsqrt(var + 1e-5)
        h = jnp.maximum(h * gamma + beta, 0.0)

        # Torch's x.view(-1, 64) on the NCL tensor + Linear(64, 1), folded so no
        # in-kernel transpose is needed:
        #   z[n, g] = sum_{k, l} h_ncl[n, g*K + k, l] * w[k*L + l] + b
        t = h * s_full                                         # elementwise (VPU)
        u = jnp.dot(r_mat, t, preferred_element_type=jnp.float32)   # (N, 64)
        z = jnp.dot(u, g_mat, preferred_element_type=jnp.float32) + lin_b
        out_ref[...] = pl.reciprocal(1.0 + jnp.exp(-z), approx=True)  # sigmoid

    return kernel


# ---------------------------------------------------------------------------
# Wrapper
# ---------------------------------------------------------------------------

def tcn_model_forward(x_ncl, params):
    """x_ncl: (N, n_features, L) -> (N*L,) sigmoid outputs (matches torch .view(-1))."""
    N, c0, L = x_ncl.shape
    C = params["bn_gamma"].shape[-1]                           # 64
    if C % L != 0:
        # TODO(synk): general L (64 % L != 0) needs an explicit row permutation of the
        # torch view(-1, 64); not required for this model configuration.
        raise NotImplementedError("fused view/linear fold requires L to divide 64")
    K = C // L                                                 # channels per view row

    # NCL -> flattened (N*L, C0) rows, row r = n*L + t (done once on the tiny input).
    x = jnp.transpose(x_ncl, (0, 2, 1)).astype(jnp.float32).reshape(N * L, c0)

    meta = []
    args = [x]
    for i, (w1, b1, w2, b2, wd, bd) in enumerate(params["blocks"]):
        d = 2 ** i
        cin, cout = w1.shape[1], w1.shape[2]
        use_past = d < L
        if use_past:
            # (2, Cin, Cout) -> (2*Cin, Cout): rows [0:Cin] = past tap, [Cin:] = current.
            args += [w1.reshape(2 * cin, cout), b1, w2.reshape(2 * cout, cout), b2]
        else:                                                  # past tap provably zero
            args += [w1[1], b1, w2[1], b2]
        has_ds = wd is not None
        if has_ds:
            args += [wd, bd]
        meta.append((d, has_ds, use_past))

    # Fold view(-1, 64) + Linear(64, 1):
    #   S[l, c]   = w[(c % K) * L + l]        (per-(time, channel) scale)
    #   R[n, r]   = 1 if r // L == n          (sum over time within a sequence)
    #   G[c, g]   = 1 if c // K == g          (sum over the K channels of view row g)
    w = params["lin_w"][:, 0]                                  # (64,)
    s = jnp.tile(w.reshape(K, L).T, (1, C // K))               # (L, C)
    s_full = jnp.tile(s, (N, 1))                               # (N*L, C)
    g_mat = (jnp.arange(C)[:, None] // K == jnp.arange(L)[None, :]).astype(jnp.float32)
    r_mat = (jnp.arange(N)[:, None] == jnp.arange(N * L)[None, :] // L).astype(jnp.float32)

    args += [params["bn_gamma"], params["bn_beta"], s_full, r_mat, g_mat,
             params["lin_b"].reshape(1, 1)]

    out2d = pl.pallas_call(
        _make_fused_kernel(tuple(meta), L),
        out_shape=jax.ShapeDtypeStruct((N, L), jnp.float32),
    )(*args)
    return out2d.reshape(-1)                                   # order n*L + g == torch view(-1)


# ---------------------------------------------------------------------------
# Deterministic parameter init (shapes follow the PyTorch module)
# ---------------------------------------------------------------------------

def init_params(key, n_features, num_channels):
    blocks = []
    cin = n_features
    for cout in num_channels:
        key, k1, k2, k3, kb1, kb2, kbd = jax.random.split(key, 7)
        # conv weights stored as (K=2, Cin, Cout): tap 0 = past sample, tap 1 = current.
        w1 = 0.1 * jax.random.normal(k1, (2, cin, cout), jnp.float32)
        b1 = 0.1 * jax.random.normal(kb1, (1, cout), jnp.float32)
        w2 = 0.1 * jax.random.normal(k2, (2, cout, cout), jnp.float32)
        b2 = 0.1 * jax.random.normal(kb2, (1, cout), jnp.float32)
        if cin != cout:
            wd = 0.1 * jax.random.normal(k3, (cin, cout), jnp.float32)
            bd = 0.1 * jax.random.normal(kbd, (1, cout), jnp.float32)
        else:
            wd, bd = None, None
        blocks.append((w1, b1, w2, b2, wd, bd))
        cin = cout

    c_last = num_channels[-1]                                  # 64
    key, kl = jax.random.split(key)
    bound = (6.0 / (c_last + 1)) ** 0.5                        # xavier_uniform for Linear(64, 1)
    lin_w = jax.random.uniform(kl, (c_last, 1), jnp.float32, -bound, bound)
    lin_b = jnp.zeros((1, 1), jnp.float32)                     # constant_(bias, 0)

    return {
        "blocks": blocks,
        "bn_gamma": jnp.ones((1, c_last), jnp.float32),
        "bn_beta": jnp.zeros((1, c_last), jnp.float32),
        "lin_w": lin_w,
        "lin_b": lin_b,
    }


# ---------------------------------------------------------------------------
# Pure-JAX reference (mirrors the PyTorch forward) for a correctness self-check
# ---------------------------------------------------------------------------

def reference_forward(x_ncl, params):
    N, _, L = x_ncl.shape
    hi = jax.lax.Precision.HIGHEST
    h = x_ncl.astype(jnp.float32)                              # (N, C, L)
    for i, (w1, b1, w2, b2, wd, bd) in enumerate(params["blocks"]):
        d = 2 ** i

        def conv(z, w, b):
            zp = jnp.pad(z, ((0, 0), (0, 0), (d, 0)))[:, :, :L]        # z[t - d], zero-padded
            return (jnp.einsum("ncl,co->nol", zp, w[0], precision=hi)
                    + jnp.einsum("ncl,co->nol", z, w[1], precision=hi)
                    + b.reshape(1, -1, 1))

        a = jax.nn.relu(conv(h, w1, b1))
        a = jax.nn.relu(conv(a, w2, b2))
        if wd is not None:
            res = jnp.einsum("ncl,co->nol", h, wd, precision=hi) + bd.reshape(1, -1, 1)
        else:
            res = h
        h = jax.nn.relu(a + res)

    mean = h.mean(axis=(0, 2), keepdims=True)                  # BN train mode, biased var
    var = ((h - mean) ** 2).mean(axis=(0, 2), keepdims=True)
    h = (h - mean) * jax.lax.rsqrt(var + 1e-5)
    h = jax.nn.relu(h * params["bn_gamma"].reshape(1, -1, 1)
                    + params["bn_beta"].reshape(1, -1, 1))
    rows = h.reshape(-1, h.shape[1])                           # torch x.view(-1, 64) on NCL
    z = jnp.dot(rows, params["lin_w"], precision=hi) + params["lin_b"].reshape(1, 1)
    return jax.nn.sigmoid(z).reshape(-1)


# ---------------------------------------------------------------------------

if __name__ == "__main__":
    N, n_features, L = 2, 4, 16
    num_channels = [2 ** i for i in range(7)]                  # [1, 2, 4, 8, 16, 32, 64]

    key = jax.random.PRNGKey(0)
    key, kx = jax.random.split(key)
    x = jax.random.normal(kx, (N, n_features, L), jnp.float32)  # PyTorch NCL input
    params = init_params(key, n_features, num_channels)

    fwd = jax.jit(tcn_model_forward)
    out = jax.block_until_ready(fwd(x, params))
    assert out.shape == (N * L,), out.shape
    assert bool(jnp.all(jnp.isfinite(out)))

    ref = reference_forward(x, params)
    max_err = float(jnp.max(jnp.abs(out - ref)))
    assert max_err < 5e-3, f"mismatch vs pure-JAX reference: {max_err}"

    print("KERNEL_OK")
</pallas_src>

<mosaic_0001>
module attributes {stable_mosaic.version = 11 : i64} {
  func.func @kernel(%arg0: memref<32x4xf32, #tpu.memory_space<vmem>>, %arg1: memref<8x1xf32, #tpu.memory_space<vmem>>, %arg2: memref<1x1xf32, #tpu.memory_space<vmem>>, %arg3: memref<2x1xf32, #tpu.memory_space<vmem>>, %arg4: memref<1x1xf32, #tpu.memory_space<vmem>>, %arg5: memref<4x1xf32, #tpu.memory_space<vmem>>, %arg6: memref<1x1xf32, #tpu.memory_space<vmem>>, %arg7: memref<2x2xf32, #tpu.memory_space<vmem>>, %arg8: memref<1x2xf32, #tpu.memory_space<vmem>>, %arg9: memref<4x2xf32, #tpu.memory_space<vmem>>, %arg10: memref<1x2xf32, #tpu.memory_space<vmem>>, %arg11: memref<1x2xf32, #tpu.memory_space<vmem>>, %arg12: memref<1x2xf32, #tpu.memory_space<vmem>>, %arg13: memref<4x4xf32, #tpu.memory_space<vmem>>, %arg14: memref<1x4xf32, #tpu.memory_space<vmem>>, %arg15: memref<8x4xf32, #tpu.memory_space<vmem>>, %arg16: memref<1x4xf32, #tpu.memory_space<vmem>>, %arg17: memref<2x4xf32, #tpu.memory_space<vmem>>, %arg18: memref<1x4xf32, #tpu.memory_space<vmem>>, %arg19: memref<8x8xf32, #tpu.memory_space<vmem>>, %arg20: memref<1x8xf32, #tpu.memory_space<vmem>>, %arg21: memref<16x8xf32, #tpu.memory_space<vmem>>, %arg22: memref<1x8xf32, #tpu.memory_space<vmem>>, %arg23: memref<4x8xf32, #tpu.memory_space<vmem>>, %arg24: memref<1x8xf32, #tpu.memory_space<vmem>>, %arg25: memref<8x16xf32, #tpu.memory_space<vmem>>, %arg26: memref<1x16xf32, #tpu.memory_space<vmem>>, %arg27: memref<16x16xf32, #tpu.memory_space<vmem>>, %arg28: memref<1x16xf32, #tpu.memory_space<vmem>>, %arg29: memref<8x16xf32, #tpu.memory_space<vmem>>, %arg30: memref<1x16xf32, #tpu.memory_space<vmem>>, %arg31: memref<16x32xf32, #tpu.memory_space<vmem>>, %arg32: memref<1x32xf32, #tpu.memory_space<vmem>>, %arg33: memref<32x32xf32, #tpu.memory_space<vmem>>, %arg34: memref<1x32xf32, #tpu.memory_space<vmem>>, %arg35: memref<16x32xf32, #tpu.memory_space<vmem>>, %arg36: memref<1x32xf32, #tpu.memory_space<vmem>>, %arg37: memref<32x64xf32, #tpu.memory_space<vmem>>, %arg38: memref<1x64xf32, #tpu.memory_space<vmem>>, %arg39: memref<64x64xf32, #tpu.memory_space<vmem>>, %arg40: memref<1x64xf32, #tpu.memory_space<vmem>>, %arg41: memref<32x64xf32, #tpu.memory_space<vmem>>, %arg42: memref<1x64xf32, #tpu.memory_space<vmem>>, %arg43: memref<1x64xf32, #tpu.memory_space<vmem>>, %arg44: memref<1x64xf32, #tpu.memory_space<vmem>>, %arg45: memref<32x64xf32, #tpu.memory_space<vmem>>, %arg46: memref<2x32xf32, #tpu.memory_space<vmem>>, %arg47: memref<64x16xf32, #tpu.memory_space<vmem>>, %arg48: memref<1x1xf32, #tpu.memory_space<vmem>>, %arg49: memref<2x16xf32, #tpu.memory_space<vmem>>) attributes {dimension_semantics = [], scalar_prefetch = 0 : i64, scratch_operands = 0 : i64, tpu.core_type = #tpu.core_type<tc>} {
    %c0 = arith.constant 0 : index
    %c0_0 = arith.constant 0 : index
    %0 = vector.load %arg0[%c0, %c0_0] : memref<32x4xf32, #tpu.memory_space<vmem>>, vector<32x4xf32>
    %c0_1 = arith.constant 0 : index
    %c0_2 = arith.constant 0 : index
    %1 = vector.load %arg1[%c0_1, %c0_2] : memref<8x1xf32, #tpu.memory_space<vmem>>, vector<8x1xf32>
    %c0_3 = arith.constant 0 : index
    %c0_4 = arith.constant 0 : index
    %2 = vector.load %arg2[%c0_3, %c0_4] : memref<1x1xf32, #tpu.memory_space<vmem>>, vector<1x1xf32>
    %c0_5 = arith.constant 0 : index
    %c0_6 = arith.constant 0 : index
    %3 = vector.load %arg3[%c0_5, %c0_6] : memref<2x1xf32, #tpu.memory_space<vmem>>, vector<2x1xf32>
    %c0_7 = arith.constant 0 : index
    %c0_8 = arith.constant 0 : index
    %4 = vector.load %arg4[%c0_7, %c0_8] : memref<1x1xf32, #tpu.memory_space<vmem>>, vector<1x1xf32>
    %c1_i32 = arith.constant 1 : i32
    %5 = tpu.dynamic_rotate %0 by %c1_i32 dim 0 : vector<32x4xf32>, i32 -> vector<32x4xf32>
    %6 = tpu.iota {dimensions = array<i32: 0>} : vector<32x1xi32>
    %c16_i32 = arith.constant 16 : i32
    %c0_i32 = arith.constant 0 : i32
    %7 = arith.cmpi eq, %c16_i32, %c0_i32 : i32
    %c1_i32_9 = arith.constant 1 : i32
    %8 = arith.select %7, %c1_i32_9, %c16_i32 : i32
    %9 = vector.broadcast %8 : i32 to vector<32x1xi32>
    %10 = arith.remsi %6, %9 : vector<32x1xi32>
    %c0_i32_10 = arith.constant 0 : i32
    %11 = vector.broadcast %c0_i32_10 : i32 to vector<32x1xi32>
    %12 = arith.cmpi ne, %10, %11 : vector<32x1xi32>
    %c0_i32_11 = arith.constant 0 : i32
    %13 = vector.broadcast %c0_i32_11 : i32 to vector<32x1xi32>
    %14 = arith.cmpi slt, %10, %13 : vector<32x1xi32>
    %c0_i32_12 = arith.constant 0 : i32
    %15 = arith.cmpi slt, %8, %c0_i32_12 : i32
    %16 = vector.broadcast %15 : i1 to vector<32x1xi1>
    %17 = vector.broadcast %16 : vector<32x1xi1> to vector<32x1xi1>
    %18 = arith.xori %14, %17 : vector<32x1xi1>
    %19 = arith.andi %18, %12 : vector<32x1xi1>
    %20 = vector.broadcast %8 : i32 to vector<32x1xi32>
    %21 = arith.addi %10, %20 : vector<32x1xi32>
    %22 = arith.select %19, %21, %10 : vector<32x1xi1>, vector<32x1xi32>
    %c1_i32_13 = arith.constant 1 : i32
    %23 = vector.broadcast %c1_i32_13 : i32 to vector<32x1xi32>
    %24 = arith.cmpi sge, %22, %23 : vector<32x1xi32>
    %cst = arith.constant 0.000000e+00 : f32
    %25 = vector.shape_cast %24 : vector<32x1xi1> to vector<32x1xi1>
    %26 = vector.broadcast %25 : vector<32x1xi1> to vector<32x4xi1>
    %27 = vector.broadcast %cst : f32 to vector<32x4xf32>
    %28 = arith.select %26, %5, %27 : vector<32x4xi1>, vector<32x4xf32>
    %29 = tpu.concatenate %28, %0 in 1 : vector<32x4xf32>, vector<32x4xf32> -> vector<32x8xf32>
    %cst_14 = arith.constant dense<0.000000e+00> : vector<32x1xf32>
    %30 = tpu.matmul %29, %1, %cst_14 {dimension_numbers = #tpu.dot_dimension_numbers<[1], [0], [0], [1], [0, 0, 1, 1], [], []>} : vector<32x8xf32>, vector<8x1xf32>, vector<32x1xf32> -> vector<32x1xf32>
    %31 = vector.broadcast %2 : vector<1x1xf32> to vector<32x1xf32>
    %32 = arith.addf %30, %31 : vector<32x1xf32>
    %cst_15 = arith.constant 0.000000e+00 : f32
    %33 = vector.broadcast %cst_15 : f32 to vector<32x1xf32>
    %34 = arith.maximumf %32, %33 : vector<32x1xf32>
    %c1_i32_16 = arith.constant 1 : i32
    %35 = tpu.dynamic_rotate %34 by %c1_i32_16 dim 0 : vector<32x1xf32>, i32 -> vector<32x1xf32>
    %36 = tpu.iota {dimensions = array<i32: 0>} : vector<32x1xi32>
    %c16_i32_17 = arith.constant 16 : i32
    %c0_i32_18 = arith.constant 0 : i32
    %37 = arith.cmpi eq, %c16_i32_17, %c0_i32_18 : i32
    %c1_i32_19 = arith.constant 1 : i32
    %38 = arith.select %37, %c1_i32_19, %c16_i32_17 : i32
    %39 = vector.broadcast %38 : i32 to vector<32x1xi32>
    %40 = arith.remsi %36, %39 : vector<32x1xi32>
    %c0_i32_20 = arith.constant 0 : i32
    %41 = vector.broadcast %c0_i32_20 : i32 to vector<32x1xi32>
    %42 = arith.cmpi ne, %40, %41 : vector<32x1xi32>
    %c0_i32_21 = arith.constant 0 : i32
    %43 = vector.broadcast %c0_i32_21 : i32 to vector<32x1xi32>
    %44 = arith.cmpi slt, %40, %43 : vector<32x1xi32>
    %c0_i32_22 = arith.constant 0 : i32
    %45 = arith.cmpi slt, %38, %c0_i32_22 : i32
    %46 = vector.broadcast %45 : i1 to vector<32x1xi1>
    %47 = vector.broadcast %46 : vector<32x1xi1> to vector<32x1xi1>
    %48 = arith.xori %44, %47 : vector<32x1xi1>
    %49 = arith.andi %48, %42 : vector<32x1xi1>
    %50 = vector.broadcast %38 : i32 to vector<32x1xi32>
    %51 = arith.addi %40, %50 : vector<32x1xi32>
    %52 = arith.select %49, %51, %40 : vector<32x1xi1>, vector<32x1xi32>
    %c1_i32_23 = arith.constant 1 : i32
    %53 = vector.broadcast %c1_i32_23 : i32 to vector<32x1xi32>
    %54 = arith.cmpi sge, %52, %53 : vector<32x1xi32>
    %cst_24 = arith.constant 0.000000e+00 : f32
    %55 = vector.broadcast %cst_24 : f32 to vector<32x1xf32>
    %56 = arith.select %54, %35, %55 : vector<32x1xi1>, vector<32x1xf32>
    %57 = tpu.concatenate %56, %34 in 1 : vector<32x1xf32>, vector<32x1xf32> -> vector<32x2xf32>
    %cst_25 = arith.constant dense<0.000000e+00> : vector<32x1xf32>
    %58 = tpu.matmul %57, %3, %cst_25 {dimension_numbers = #tpu.dot_dimension_numbers<[1], [0], [0], [1], [0, 0, 1, 1], [], []>} : vector<32x2xf32>, vector<2x1xf32>, vector<32x1xf32> -> vector<32x1xf32>
    %59 = vector.broadcast %4 : vector<1x1xf32> to vector<32x1xf32>
    %60 = arith.addf %58, %59 : vector<32x1xf32>
    %cst_26 = arith.constant 0.000000e+00 : f32
    %61 = vector.broadcast %cst_26 : f32 to vector<32x1xf32>
    %62 = arith.maximumf %60, %61 : vector<32x1xf32>
    %c0_27 = arith.constant 0 : index
    %c0_28 = arith.constant 0 : index
    %63 = vector.load %arg5[%c0_27, %c0_28] : memref<4x1xf32, #tpu.memory_space<vmem>>, vector<4x1xf32>
    %c0_29 = arith.constant 0 : index
    %c0_30 = arith.constant 0 : index
    %64 = vector.load %arg6[%c0_29, %c0_30] : memref<1x1xf32, #tpu.memory_space<vmem>>, vector<1x1xf32>
    %cst_31 = arith.constant dense<0.000000e+00> : vector<32x1xf32>
    %65 = tpu.matmul %0, %63, %cst_31 {dimension_numbers = #tpu.dot_dimension_numbers<[1], [0], [0], [1], [0, 0, 1, 1], [], []>} : vector<32x4xf32>, vector<4x1xf32>, vector<32x1xf32> -> vector<32x1xf32>
    %66 = vector.broadcast %64 : vector<1x1xf32> to vector<32x1xf32>
    %67 = arith.addf %65, %66 : vector<32x1xf32>
    %68 = arith.addf %62, %67 : vector<32x1xf32>
    %cst_32 = arith.constant 0.000000e+00 : f32
    %69 = vector.broadcast %cst_32 : f32 to vector<32x1xf32>
    %70 = arith.maximumf %68, %69 : vector<32x1xf32>
    %c0_33 = arith.constant 0 : index
    %c0_34 = arith.constant 0 : index
    %71 = vector.load %arg7[%c0_33, %c0_34] : memref<2x2xf32, #tpu.memory_space<vmem>>, vector<2x2xf32>
    %c0_35 = arith.constant 0 : index
    %c0_36 = arith.constant 0 : index
    %72 = vector.load %arg8[%c0_35, %c0_36] : memref<1x2xf32, #tpu.memory_space<vmem>>, vector<1x2xf32>
    %c0_37 = arith.constant 0 : index
    %c0_38 = arith.constant 0 : index
    %73 = vector.load %arg9[%c0_37, %c0_38] : memref<4x2xf32, #tpu.memory_space<vmem>>, vector<4x2xf32>
    %c0_39 = arith.constant 0 : index
    %c0_40 = arith.constant 0 : index
    %74 = vector.load %arg10[%c0_39, %c0_40] : memref<1x2xf32, #tpu.memory_space<vmem>>, vector<1x2xf32>
    %c2_i32 = arith.constant 2 : i32
    %75 = tpu.dynamic_rotate %70 by %c2_i32 dim 0 : vector<32x1xf32>, i32 -> vector<32x1xf32>
    %76 = tpu.iota {dimensions = array<i32: 0>} : vector<32x1xi32>
    %c16_i32_41 = arith.constant 16 : i32
    %c0_i32_42 = arith.constant 0 : i32
    %77 = arith.cmpi eq, %c16_i32_41, %c0_i32_42 : i32
    %c1_i32_43 = arith.constant 1 : i32
    %78 = arith.select %77, %c1_i32_43, %c16_i32_41 : i32
    %79 = vector.broadcast %78 : i32 to vector<32x1xi32>
    %80 = arith.remsi %76, %79 : vector<32x1xi32>
    %c0_i32_44 = arith.constant 0 : i32
    %81 = vector.broadcast %c0_i32_44 : i32 to vector<32x1xi32>
    %82 = arith.cmpi ne, %80, %81 : vector<32x1xi32>
    %c0_i32_45 = arith.constant 0 : i32
    %83 = vector.broadcast %c0_i32_45 : i32 to vector<32x1xi32>
    %84 = arith.cmpi slt, %80, %83 : vector<32x1xi32>
    %c0_i32_46 = arith.constant 0 : i32
    %85 = arith.cmpi slt, %78, %c0_i32_46 : i32
    %86 = vector.broadcast %85 : i1 to vector<32x1xi1>
    %87 = vector.broadcast %86 : vector<32x1xi1> to vector<32x1xi1>
    %88 = arith.xori %84, %87 : vector<32x1xi1>
    %89 = arith.andi %88, %82 : vector<32x1xi1>
    %90 = vector.broadcast %78 : i32 to vector<32x1xi32>
    %91 = arith.addi %80, %90 : vector<32x1xi32>
    %92 = arith.select %89, %91, %80 : vector<32x1xi1>, vector<32x1xi32>
    %c2_i32_47 = arith.constant 2 : i32
    %93 = vector.broadcast %c2_i32_47 : i32 to vector<32x1xi32>
    %94 = arith.cmpi sge, %92, %93 : vector<32x1xi32>
    %cst_48 = arith.constant 0.000000e+00 : f32
    %95 = vector.broadcast %cst_48 : f32 to vector<32x1xf32>
    %96 = arith.select %94, %75, %95 : vector<32x1xi1>, vector<32x1xf32>
    %97 = tpu.concatenate %96, %70 in 1 : vector<32x1xf32>, vector<32x1xf32> -> vector<32x2xf32>
    %cst_49 = arith.constant dense<0.000000e+00> : vector<32x2xf32>
    %98 = tpu.matmul %97, %71, %cst_49 {dimension_numbers = #tpu.dot_dimension_numbers<[1], [0], [0], [1], [0, 0, 1, 1], [], []>} : vector<32x2xf32>, vector<2x2xf32>, vector<32x2xf32> -> vector<32x2xf32>
    %99 = vector.broadcast %72 : vector<1x2xf32> to vector<32x2xf32>
    %100 = arith.addf %98, %99 : vector<32x2xf32>
    %cst_50 = arith.constant 0.000000e+00 : f32
    %101 = vector.broadcast %cst_50 : f32 to vector<32x2xf32>
    %102 = arith.maximumf %100, %101 : vector<32x2xf32>
    %c2_i32_51 = arith.constant 2 : i32
    %103 = tpu.dynamic_rotate %102 by %c2_i32_51 dim 0 : vector<32x2xf32>, i32 -> vector<32x2xf32>
    %104 = tpu.iota {dimensions = array<i32: 0>} : vector<32x1xi32>
    %c16_i32_52 = arith.constant 16 : i32
    %c0_i32_53 = arith.constant 0 : i32
    %105 = arith.cmpi eq, %c16_i32_52, %c0_i32_53 : i32
    %c1_i32_54 = arith.constant 1 : i32
    %106 = arith.select %105, %c1_i32_54, %c16_i32_52 : i32
    %107 = vector.broadcast %106 : i32 to vector<32x1xi32>
    %108 = arith.remsi %104, %107 : vector<32x1xi32>
    %c0_i32_55 = arith.constant 0 : i32
    %109 = vector.broadcast %c0_i32_55 : i32 to vector<32x1xi32>
    %110 = arith.cmpi ne, %108, %109 : vector<32x1xi32>
    %c0_i32_56 = arith.constant 0 : i32
    %111 = vector.broadcast %c0_i32_56 : i32 to vector<32x1xi32>
    %112 = arith.cmpi slt, %108, %111 : vector<32x1xi32>
    %c0_i32_57 = arith.constant 0 : i32
    %113 = arith.cmpi slt, %106, %c0_i32_57 : i32
    %114 = vector.broadcast %113 : i1 to vector<32x1xi1>
    %115 = vector.broadcast %114 : vector<32x1xi1> to vector<32x1xi1>
    %116 = arith.xori %112, %115 : vector<32x1xi1>
    %117 = arith.andi %116, %110 : vector<32x1xi1>
    %118 = vector.broadcast %106 : i32 to vector<32x1xi32>
    %119 = arith.addi %108, %118 : vector<32x1xi32>
    %120 = arith.select %117, %119, %108 : vector<32x1xi1>, vector<32x1xi32>
    %c2_i32_58 = arith.constant 2 : i32
    %121 = vector.broadcast %c2_i32_58 : i32 to vector<32x1xi32>
    %122 = arith.cmpi sge, %120, %121 : vector<32x1xi32>
    %cst_59 = arith.constant 0.000000e+00 : f32
    %123 = vector.shape_cast %122 : vector<32x1xi1> to vector<32x1xi1>
    %124 = vector.broadcast %123 : vector<32x1xi1> to vector<32x2xi1>
    %125 = vector.broadcast %cst_59 : f32 to vector<32x2xf32>
    %126 = arith.select %124, %103, %125 : vector<32x2xi1>, vector<32x2xf32>
    %127 = tpu.concatenate %126, %102 in 1 : vector<32x2xf32>, vector<32x2xf32> -> vector<32x4xf32>
    %cst_60 = arith.constant dense<0.000000e+00> : vector<32x2xf32>
    %128 = tpu.matmul %127, %73, %cst_60 {dimension_numbers = #tpu.dot_dimension_numbers<[1], [0], [0], [1], [0, 0, 1, 1], [], []>} : vector<32x4xf32>, vector<4x2xf32>, vector<32x2xf32> -> vector<32x2xf32>
    %129 = vector.broadcast %74 : vector<1x2xf32> to vector<32x2xf32>
    %130 = arith.addf %128, %129 : vector<32x2xf32>
    %cst_61 = arith.constant 0.000000e+00 : f32
    %131 = vector.broadcast %cst_61 : f32 to vector<32x2xf32>
    %132 = arith.maximumf %130, %131 : vector<32x2xf32>
    %c0_62 = arith.constant 0 : index
    %c0_63 = arith.constant 0 : index
    %133 = vector.load %arg11[%c0_62, %c0_63] : memref<1x2xf32, #tpu.memory_space<vmem>>, vector<1x2xf32>
    %c0_64 = arith.constant 0 : index
    %c0_65 = arith.constant 0 : index
    %134 = vector.load %arg12[%c0_64, %c0_65] : memref<1x2xf32, #tpu.memory_space<vmem>>, vector<1x2xf32>
    %cst_66 = arith.constant dense<0.000000e+00> : vector<32x2xf32>
    %135 = tpu.matmul %70, %133, %cst_66 {dimension_numbers = #tpu.dot_dimension_numbers<[1], [0], [0], [1], [0, 0, 1, 1], [], []>} : vector<32x1xf32>, vector<1x2xf32>, vector<32x2xf32> -> vector<32x2xf32>
    %136 = vector.broadcast %134 : vector<1x2xf32> to vector<32x2xf32>
    %137 = arith.addf %135, %136 : vector<32x2xf32>
    %138 = arith.addf %132, %137 : vector<32x2xf32>
    %cst_67 = arith.constant 0.000000e+00 : f32
    %139 = vector.broadcast %cst_67 : f32 to vector<32x2xf32>
    %140 = arith.maximumf %138, %139 : vector<32x2xf32>
    %c0_68 = arith.constant 0 : index
    %c0_69 = arith.constant 0 : index
    %141 = vector.load %arg13[%c0_68, %c0_69] : memref<4x4xf32, #tpu.memory_space<vmem>>, vector<4x4xf32>
    %c0_70 = arith.constant 0 : index
    %c0_71 = arith.constant 0 : index
    %142 = vector.load %arg14[%c0_70, %c0_71] : memref<1x4xf32, #tpu.memory_space<vmem>>, vector<1x4xf32>
    %c0_72 = arith.constant 0 : index
    %c0_73 = arith.constant 0 : index
    %143 = vector.load %arg15[%c0_72, %c0_73] : memref<8x4xf32, #tpu.memory_space<vmem>>, vector<8x4xf32>
    %c0_74 = arith.constant 0 : index
    %c0_75 = arith.constant 0 : index
    %144 = vector.load %arg16[%c0_74, %c0_75] : memref<1x4xf32, #tpu.memory_space<vmem>>, vector<1x4xf32>
    %c4_i32 = arith.constant 4 : i32
    %145 = tpu.dynamic_rotate %140 by %c4_i32 dim 0 : vector<32x2xf32>, i32 -> vector<32x2xf32>
    %146 = tpu.iota {dimensions = array<i32: 0>} : vector<32x1xi32>
    %c16_i32_76 = arith.constant 16 : i32
    %c0_i32_77 = arith.constant 0 : i32
    %147 = arith.cmpi eq, %c16_i32_76, %c0_i32_77 : i32
    %c1_i32_78 = arith.constant 1 : i32
    %148 = arith.select %147, %c1_i32_78, %c16_i32_76 : i32
    %149 = vector.broadcast %148 : i32 to vector<32x1xi32>
    %150 = arith.remsi %146, %149 : vector<32x1xi32>
    %c0_i32_79 = arith.constant 0 : i32
    %151 = vector.broadcast %c0_i32_79 : i32 to vector<32x1xi32>
    %152 = arith.cmpi ne, %150, %151 : vector<32x1xi32>
    %c0_i32_80 = arith.constant 0 : i32
    %153 = vector.broadcast %c0_i32_80 : i32 to vector<32x1xi32>
    %154 = arith.cmpi slt, %150, %153 : vector<32x1xi32>
    %c0_i32_81 = arith.constant 0 : i32
    %155 = arith.cmpi slt, %148, %c0_i32_81 : i32
    %156 = vector.broadcast %155 : i1 to vector<32x1xi1>
    %157 = vector.broadcast %156 : vector<32x1xi1> to vector<32x1xi1>
    %158 = arith.xori %154, %157 : vector<32x1xi1>
    %159 = arith.andi %158, %152 : vector<32x1xi1>
    %160 = vector.broadcast %148 : i32 to vector<32x1xi32>
    %161 = arith.addi %150, %160 : vector<32x1xi32>
    %162 = arith.select %159, %161, %150 : vector<32x1xi1>, vector<32x1xi32>
    %c4_i32_82 = arith.constant 4 : i32
    %163 = vector.broadcast %c4_i32_82 : i32 to vector<32x1xi32>
    %164 = arith.cmpi sge, %162, %163 : vector<32x1xi32>
    %cst_83 = arith.constant 0.000000e+00 : f32
    %165 = vector.shape_cast %164 : vector<32x1xi1> to vector<32x1xi1>
    %166 = vector.broadcast %165 : vector<32x1xi1> to vector<32x2xi1>
    %167 = vector.broadcast %cst_83 : f32 to vector<32x2xf32>
    %168 = arith.select %166, %145, %167 : vector<32x2xi1>, vector<32x2xf32>
    %169 = tpu.concatenate %168, %140 in 1 : vector<32x2xf32>, vector<32x2xf32> -> vector<32x4xf32>
    %cst_84 = arith.constant dense<0.000000e+00> : vector<32x4xf32>
    %170 = tpu.matmul %169, %141, %cst_84 {dimension_numbers = #tpu.dot_dimension_numbers<[1], [0], [0], [1], [0, 0, 1, 1], [], []>} : vector<32x4xf32>, vector<4x4xf32>, vector<32x4xf32> -> vector<32x4xf32>
    %171 = vector.broadcast %142 : vector<1x4xf32> to vector<32x4xf32>
    %172 = arith.addf %170, %171 : vector<32x4xf32>
    %cst_85 = arith.constant 0.000000e+00 : f32
    %173 = vector.broadcast %cst_85 : f32 to vector<32x4xf32>
    %174 = arith.maximumf %172, %173 : vector<32x4xf32>
    %c4_i32_86 = arith.constant 4 : i32
    %175 = tpu.dynamic_rotate %174 by %c4_i32_86 dim 0 : vector<32x4xf32>, i32 -> vector<32x4xf32>
    %176 = tpu.iota {dimensions = array<i32: 0>} : vector<32x1xi32>
    %c16_i32_87 = arith.constant 16 : i32
    %c0_i32_88 = arith.constant 0 : i32
    %177 = arith.cmpi eq, %c16_i32_87, %c0_i32_88 : i32
    %c1_i32_89 = arith.constant 1 : i32
    %178 = arith.select %177, %c1_i32_89, %c16_i32_87 : i32
    %179 = vector.broadcast %178 : i32 to vector<32x1xi32>
    %180 = arith.remsi %176, %179 : vector<32x1xi32>
    %c0_i32_90 = arith.constant 0 : i32
    %181 = vector.broadcast %c0_i32_90 : i32 to vector<32x1xi32>
    %182 = arith.cmpi ne, %180, %181 : vector<32x1xi32>
    %c0_i32_91 = arith.constant 0 : i32
    %183 = vector.broadcast %c0_i32_91 : i32 to vector<32x1xi32>
    %184 = arith.cmpi slt, %180, %183 : vector<32x1xi32>
    %c0_i32_92 = arith.constant 0 : i32
    %185 = arith.cmpi slt, %178, %c0_i32_92 : i32
    %186 = vector.broadcast %185 : i1 to vector<32x1xi1>
    %187 = vector.broadcast %186 : vector<32x1xi1> to vector<32x1xi1>
    %188 = arith.xori %184, %187 : vector<32x1xi1>
    %189 = arith.andi %188, %182 : vector<32x1xi1>
    %190 = vector.broadcast %178 : i32 to vector<32x1xi32>
    %191 = arith.addi %180, %190 : vector<32x1xi32>
    %192 = arith.select %189, %191, %180 : vector<32x1xi1>, vector<32x1xi32>
    %c4_i32_93 = arith.constant 4 : i32
    %193 = vector.broadcast %c4_i32_93 : i32 to vector<32x1xi32>
    %194 = arith.cmpi sge, %192, %193 : vector<32x1xi32>
    %cst_94 = arith.constant 0.000000e+00 : f32
    %195 = vector.shape_cast %194 : vector<32x1xi1> to vector<32x1xi1>
    %196 = vector.broadcast %195 : vector<32x1xi1> to vector<32x4xi1>
    %197 = vector.broadcast %cst_94 : f32 to vector<32x4xf32>
    %198 = arith.select %196, %175, %197 : vector<32x4xi1>, vector<32x4xf32>
    %199 = tpu.concatenate %198, %174 in 1 : vector<32x4xf32>, vector<32x4xf32> -> vector<32x8xf32>
    %cst_95 = arith.constant dense<0.000000e+00> : vector<32x4xf32>
    %200 = tpu.matmul %199, %143, %cst_95 {dimension_numbers = #tpu.dot_dimension_numbers<[1], [0], [0], [1], [0, 0, 1, 1], [], []>} : vector<32x8xf32>, vector<8x4xf32>, vector<32x4xf32> -> vector<32x4xf32>
    %201 = vector.broadcast %144 : vector<1x4xf32> to vector<32x4xf32>
    %202 = arith.addf %200, %201 : vector<32x4xf32>
    %cst_96 = arith.constant 0.000000e+00 : f32
    %203 = vector.broadcast %cst_96 : f32 to vector<32x4xf32>
    %204 = arith.maximumf %202, %203 : vector<32x4xf32>
    %c0_97 = arith.constant 0 : index
    %c0_98 = arith.constant 0 : index
    %205 = vector.load %arg17[%c0_97, %c0_98] : memref<2x4xf32, #tpu.memory_space<vmem>>, vector<2x4xf32>
    %c0_99 = arith.constant 0 : index
    %c0_100 = arith.constant 0 : index
    %206 = vector.load %arg18[%c0_99, %c0_100] : memref<1x4xf32, #tpu.memory_space<vmem>>, vector<1x4xf32>
    %cst_101 = arith.constant dense<0.000000e+00> : vector<32x4xf32>
    %207 = tpu.matmul %140, %205, %cst_101 {dimension_numbers = #tpu.dot_dimension_numbers<[1], [0], [0], [1], [0, 0, 1, 1], [], []>} : vector<32x2xf32>, vector<2x4xf32>, vector<32x4xf32> -> vector<32x4xf32>
    %208 = vector.broadcast %206 : vector<1x4xf32> to vector<32x4xf32>
    %209 = arith.addf %207, %208 : vector<32x4xf32>
    %210 = arith.addf %204, %209 : vector<32x4xf32>
    %cst_102 = arith.constant 0.000000e+00 : f32
    %211 = vector.broadcast %cst_102 : f32 to vector<32x4xf32>
    %212 = arith.maximumf %210, %211 : vector<32x4xf32>
    %c0_103 = arith.constant 0 : index
    %c0_104 = arith.constant 0 : index
    %213 = vector.load %arg19[%c0_103, %c0_104] : memref<8x8xf32, #tpu.memory_space<vmem>>, vector<8x8xf32>
    %c0_105 = arith.constant 0 : index
    %c0_106 = arith.constant 0 : index
    %214 = vector.load %arg20[%c0_105, %c0_106] : memref<1x8xf32, #tpu.memory_space<vmem>>, vector<1x8xf32>
    %c0_107 = arith.constant 0 : index
    %c0_108 = arith.constant 0 : index
    %215 = vector.load %arg21[%c0_107, %c0_108] : memref<16x8xf32, #tpu.memory_space<vmem>>, vector<16x8xf32>
    %c0_109 = arith.constant 0 : index
    %c0_110 = arith.constant 0 : index
    %216 = vector.load %arg22[%c0_109, %c0_110] : memref<1x8xf32, #tpu.memory_space<vmem>>, vector<1x8xf32>
    %c8_i32 = arith.constant 8 : i32
    %217 = tpu.dynamic_rotate %212 by %c8_i32 dim 0 : vector<32x4xf32>, i32 -> vector<32x4xf32>
    %218 = tpu.iota {dimensions = array<i32: 0>} : vector<32x1xi32>
    %c16_i32_111 = arith.constant 16 : i32
    %c0_i32_112 = arith.constant 0 : i32
    %219 = arith.cmpi eq, %c16_i32_111, %c0_i32_112 : i32
    %c1_i32_113 = arith.constant 1 : i32
    %220 = arith.select %219, %c1_i32_113, %c16_i32_111 : i32
    %221 = vector.broadcast %220 : i32 to vector<32x1xi32>
    %222 = arith.remsi %218, %221 : vector<32x1xi32>
    %c0_i32_114 = arith.constant 0 : i32
    %223 = vector.broadcast %c0_i32_114 : i32 to vector<32x1xi32>
    %224 = arith.cmpi ne, %222, %223 : vector<32x1xi32>
    %c0_i32_115 = arith.constant 0 : i32
    %225 = vector.broadcast %c0_i32_115 : i32 to vector<32x1xi32>
    %226 = arith.cmpi slt, %222, %225 : vector<32x1xi32>
    %c0_i32_116 = arith.constant 0 : i32
    %227 = arith.cmpi slt, %220, %c0_i32_116 : i32
    %228 = vector.broadcast %227 : i1 to vector<32x1xi1>
    %229 = vector.broadcast %228 : vector<32x1xi1> to vector<32x1xi1>
    %230 = arith.xori %226, %229 : vector<32x1xi1>
    %231 = arith.andi %230, %224 : vector<32x1xi1>
    %232 = vector.broadcast %220 : i32 to vector<32x1xi32>
    %233 = arith.addi %222, %232 : vector<32x1xi32>
    %234 = arith.select %231, %233, %222 : vector<32x1xi1>, vector<32x1xi32>
    %c8_i32_117 = arith.constant 8 : i32
    %235 = vector.broadcast %c8_i32_117 : i32 to vector<32x1xi32>
    %236 = arith.cmpi sge, %234, %235 : vector<32x1xi32>
    %cst_118 = arith.constant 0.000000e+00 : f32
    %237 = vector.shape_cast %236 : vector<32x1xi1> to vector<32x1xi1>
    %238 = vector.broadcast %237 : vector<32x1xi1> to vector<32x4xi1>
    %239 = vector.broadcast %cst_118 : f32 to vector<32x4xf32>
    %240 = arith.select %238, %217, %239 : vector<32x4xi1>, vector<32x4xf32>
    %241 = tpu.concatenate %240, %212 in 1 : vector<32x4xf32>, vector<32x4xf32> -> vector<32x8xf32>
    %cst_119 = arith.constant dense<0.000000e+00> : vector<32x8xf32>
    %242 = tpu.matmul %241, %213, %cst_119 {dimension_numbers = #tpu.dot_dimension_numbers<[1], [0], [0], [1], [0, 0, 1, 1], [], []>} : vector<32x8xf32>, vector<8x8xf32>, vector<32x8xf32> -> vector<32x8xf32>
    %243 = vector.broadcast %214 : vector<1x8xf32> to vector<32x8xf32>
    %244 = arith.addf %242, %243 : vector<32x8xf32>
    %cst_120 = arith.constant 0.000000e+00 : f32
    %245 = vector.broadcast %cst_120 : f32 to vector<32x8xf32>
    %246 = arith.maximumf %244, %245 : vector<32x8xf32>
    %c8_i32_121 = arith.constant 8 : i32
    %247 = tpu.dynamic_rotate %246 by %c8_i32_121 dim 0 : vector<32x8xf32>, i32 -> vector<32x8xf32>
    %248 = tpu.iota {dimensions = array<i32: 0>} : vector<32x1xi32>
    %c16_i32_122 = arith.constant 16 : i32
    %c0_i32_123 = arith.constant 0 : i32
    %249 = arith.cmpi eq, %c16_i32_122, %c0_i32_123 : i32
    %c1_i32_124 = arith.constant 1 : i32
    %250 = arith.select %249, %c1_i32_124, %c16_i32_122 : i32
    %251 = vector.broadcast %250 : i32 to vector<32x1xi32>
    %252 = arith.remsi %248, %251 : vector<32x1xi32>
    %c0_i32_125 = arith.constant 0 : i32
    %253 = vector.broadcast %c0_i32_125 : i32 to vector<32x1xi32>
    %254 = arith.cmpi ne, %252, %253 : vector<32x1xi32>
    %c0_i32_126 = arith.constant 0 : i32
    %255 = vector.broadcast %c0_i32_126 : i32 to vector<32x1xi32>
    %256 = arith.cmpi slt, %252, %255 : vector<32x1xi32>
    %c0_i32_127 = arith.constant 0 : i32
    %257 = arith.cmpi slt, %250, %c0_i32_127 : i32
    %258 = vector.broadcast %257 : i1 to vector<32x1xi1>
    %259 = vector.broadcast %258 : vector<32x1xi1> to vector<32x1xi1>
    %260 = arith.xori %256, %259 : vector<32x1xi1>
    %261 = arith.andi %260, %254 : vector<32x1xi1>
    %262 = vector.broadcast %250 : i32 to vector<32x1xi32>
    %263 = arith.addi %252, %262 : vector<32x1xi32>
    %264 = arith.select %261, %263, %252 : vector<32x1xi1>, vector<32x1xi32>
    %c8_i32_128 = arith.constant 8 : i32
    %265 = vector.broadcast %c8_i32_128 : i32 to vector<32x1xi32>
    %266 = arith.cmpi sge, %264, %265 : vector<32x1xi32>
    %cst_129 = arith.constant 0.000000e+00 : f32
    %267 = vector.shape_cast %266 : vector<32x1xi1> to vector<32x1xi1>
    %268 = vector.broadcast %267 : vector<32x1xi1> to vector<32x8xi1>
    %269 = vector.broadcast %cst_129 : f32 to vector<32x8xf32>
    %270 = arith.select %268, %247, %269 : vector<32x8xi1>, vector<32x8xf32>
    %271 = tpu.concatenate %270, %246 in 1 : vector<32x8xf32>, vector<32x8xf32> -> vector<32x16xf32>
    %cst_130 = arith.constant dense<0.000000e+00> : vector<32x8xf32>
    %272 = tpu.matmul %271, %215, %cst_130 {dimension_numbers = #tpu.dot_dimension_numbers<[1], [0], [0], [1], [0, 0, 1, 1], [], []>} : vector<32x16xf32>, vector<16x8xf32>, vector<32x8xf32> -> vector<32x8xf32>
    %273 = vector.broadcast %216 : vector<1x8xf32> to vector<32x8xf32>
    %274 = arith.addf %272, %273 : vector<32x8xf32>
    %cst_131 = arith.constant 0.000000e+00 : f32
    %275 = vector.broadcast %cst_131 : f32 to vector<32x8xf32>
    %276 = arith.maximumf %274, %275 : vector<32x8xf32>
    %c0_132 = arith.constant 0 : index
    %c0_133 = arith.constant 0 : index
    %277 = vector.load %arg23[%c0_132, %c0_133] : memref<4x8xf32, #tpu.memory_space<vmem>>, vector<4x8xf32>
    %c0_134 = arith.constant 0 : index
    %c0_135 = arith.constant 0 : index
    %278 = vector.load %arg24[%c0_134, %c0_135] : memref<1x8xf32, #tpu.memory_space<vmem>>, vector<1x8xf32>
    %cst_136 = arith.constant dense<0.000000e+00> : vector<32x8xf32>
    %279 = tpu.matmul %212, %277, %cst_136 {dimension_numbers = #tpu.dot_dimension_numbers<[1], [0], [0], [1], [0, 0, 1, 1], [], []>} : vector<32x4xf32>, vector<4x8xf32>, vector<32x8xf32> -> vector<32x8xf32>
    %280 = vector.broadcast %278 : vector<1x8xf32> to vector<32x8xf32>
    %281 = arith.addf %279, %280 : vector<32x8xf32>
    %282 = arith.addf %276, %281 : vector<32x8xf32>
    %cst_137 = arith.constant 0.000000e+00 : f32
    %283 = vector.broadcast %cst_137 : f32 to vector<32x8xf32>
    %284 = arith.maximumf %282, %283 : vector<32x8xf32>
    %c0_138 = arith.constant 0 : index
    %c0_139 = arith.constant 0 : index
    %285 = vector.load %arg25[%c0_138, %c0_139] : memref<8x16xf32, #tpu.memory_space<vmem>>, vector<8x16xf32>
    %c0_140 = arith.constant 0 : index
    %c0_141 = arith.constant 0 : index
    %286 = vector.load %arg26[%c0_140, %c0_141] : memref<1x16xf32, #tpu.memory_space<vmem>>, vector<1x16xf32>
    %c0_142 = arith.constant 0 : index
    %c0_143 = arith.constant 0 : index
    %287 = vector.load %arg27[%c0_142, %c0_143] : memref<16x16xf32, #tpu.memory_space<vmem>>, vector<16x16xf32>
    %c0_144 = arith.constant 0 : index
    %c0_145 = arith.constant 0 : index
    %288 = vector.load %arg28[%c0_144, %c0_145] : memref<1x16xf32, #tpu.memory_space<vmem>>, vector<1x16xf32>
    %cst_146 = arith.constant dense<0.000000e+00> : vector<32x16xf32>
    %289 = tpu.matmul %284, %285, %cst_146 {dimension_numbers = #tpu.dot_dimension_numbers<[1], [0], [0], [1], [0, 0, 1, 1], [], []>} : vector<32x8xf32>, vector<8x16xf32>, vector<32x16xf32> -> vector<32x16xf32>
    %290 = vector.broadcast %286 : vector<1x16xf32> to vector<32x16xf32>
    %291 = arith.addf %289, %290 : vector<32x16xf32>
    %cst_147 = arith.constant 0.000000e+00 : f32
    %292 = vector.broadcast %cst_147 : f32 to vector<32x16xf32>
    %293 = arith.maximumf %291, %292 : vector<32x16xf32>
    %cst_148 = arith.constant dense<0.000000e+00> : vector<32x16xf32>
    %294 = tpu.matmul %293, %287, %cst_148 {dimension_numbers = #tpu.dot_dimension_numbers<[1], [0], [0], [1], [0, 0, 1, 1], [], []>} : vector<32x16xf32>, vector<16x16xf32>, vector<32x16xf32> -> vector<32x16xf32>
    %295 = vector.broadcast %288 : vector<1x16xf32> to vector<32x16xf32>
    %296 = arith.addf %294, %295 : vector<32x16xf32>
    %cst_149 = arith.constant 0.000000e+00 : f32
    %297 = vector.broadcast %cst_149 : f32 to vector<32x16xf32>
    %298 = arith.maximumf %296, %297 : vector<32x16xf32>
    %c0_150 = arith.constant 0 : index
    %c0_151 = arith.constant 0 : index
    %299 = vector.load %arg29[%c0_150, %c0_151] : memref<8x16xf32, #tpu.memory_space<vmem>>, vector<8x16xf32>
    %c0_152 = arith.constant 0 : index
    %c0_153 = arith.constant 0 : index
    %300 = vector.load %arg30[%c0_152, %c0_153] : memref<1x16xf32, #tpu.memory_space<vmem>>, vector<1x16xf32>
    %cst_154 = arith.constant dense<0.000000e+00> : vector<32x16xf32>
    %301 = tpu.matmul %284, %299, %cst_154 {dimension_numbers = #tpu.dot_dimension_numbers<[1], [0], [0], [1], [0, 0, 1, 1], [], []>} : vector<32x8xf32>, vector<8x16xf32>, vector<32x16xf32> -> vector<32x16xf32>
    %302 = vector.broadcast %300 : vector<1x16xf32> to vector<32x16xf32>
    %303 = arith.addf %301, %302 : vector<32x16xf32>
    %304 = arith.addf %298, %303 : vector<32x16xf32>
    %cst_155 = arith.constant 0.000000e+00 : f32
    %305 = vector.broadcast %cst_155 : f32 to vector<32x16xf32>
    %306 = arith.maximumf %304, %305 : vector<32x16xf32>
    %c0_156 = arith.constant 0 : index
    %c0_157 = arith.constant 0 : index
    %307 = vector.load %arg31[%c0_156, %c0_157] : memref<16x32xf32, #tpu.memory_space<vmem>>, vector<16x32xf32>
    %c0_158 = arith.constant 0 : index
    %c0_159 = arith.constant 0 : index
    %308 = vector.load %arg32[%c0_158, %c0_159] : memref<1x32xf32, #tpu.memory_space<vmem>>, vector<1x32xf32>
    %c0_160 = arith.constant 0 : index
    %c0_161 = arith.constant 0 : index
    %309 = vector.load %arg33[%c0_160, %c0_161] : memref<32x32xf32, #tpu.memory_space<vmem>>, vector<32x32xf32>
    %c0_162 = arith.constant 0 : index
    %c0_163 = arith.constant 0 : index
    %310 = vector.load %arg34[%c0_162, %c0_163] : memref<1x32xf32, #tpu.memory_space<vmem>>, vector<1x32xf32>
    %cst_164 = arith.constant dense<0.000000e+00> : vector<32x32xf32>
    %311 = tpu.matmul %306, %307, %cst_164 {dimension_numbers = #tpu.dot_dimension_numbers<[1], [0], [0], [1], [0, 0, 1, 1], [], []>} : vector<32x16xf32>, vector<16x32xf32>, vector<32x32xf32> -> vector<32x32xf32>
    %312 = vector.broadcast %308 : vector<1x32xf32> to vector<32x32xf32>
    %313 = arith.addf %311, %312 : vector<32x32xf32>
    %cst_165 = arith.constant 0.000000e+00 : f32
    %314 = vector.broadcast %cst_165 : f32 to vector<32x32xf32>
    %315 = arith.maximumf %313, %314 : vector<32x32xf32>
    %cst_166 = arith.constant dense<0.000000e+00> : vector<32x32xf32>
    %316 = tpu.matmul %315, %309, %cst_166 {dimension_numbers = #tpu.dot_dimension_numbers<[1], [0], [0], [1], [0, 0, 1, 1], [], []>} : vector<32x32xf32>, vector<32x32xf32>, vector<32x32xf32> -> vector<32x32xf32>
    %317 = vector.broadcast %310 : vector<1x32xf32> to vector<32x32xf32>
    %318 = arith.addf %316, %317 : vector<32x32xf32>
    %cst_167 = arith.constant 0.000000e+00 : f32
    %319 = vector.broadcast %cst_167 : f32 to vector<32x32xf32>
    %320 = arith.maximumf %318, %319 : vector<32x32xf32>
    %c0_168 = arith.constant 0 : index
    %c0_169 = arith.constant 0 : index
    %321 = vector.load %arg35[%c0_168, %c0_169] : memref<16x32xf32, #tpu.memory_space<vmem>>, vector<16x32xf32>
    %c0_170 = arith.constant 0 : index
    %c0_171 = arith.constant 0 : index
    %322 = vector.load %arg36[%c0_170, %c0_171] : memref<1x32xf32, #tpu.memory_space<vmem>>, vector<1x32xf32>
    %cst_172 = arith.constant dense<0.000000e+00> : vector<32x32xf32>
    %323 = tpu.matmul %306, %321, %cst_172 {dimension_numbers = #tpu.dot_dimension_numbers<[1], [0], [0], [1], [0, 0, 1, 1], [], []>} : vector<32x16xf32>, vector<16x32xf32>, vector<32x32xf32> -> vector<32x32xf32>
    %324 = vector.broadcast %322 : vector<1x32xf32> to vector<32x32xf32>
    %325 = arith.addf %323, %324 : vector<32x32xf32>
    %326 = arith.addf %320, %325 : vector<32x32xf32>
    %cst_173 = arith.constant 0.000000e+00 : f32
    %327 = vector.broadcast %cst_173 : f32 to vector<32x32xf32>
    %328 = arith.maximumf %326, %327 : vector<32x32xf32>
    %c0_174 = arith.constant 0 : index
    %c0_175 = arith.constant 0 : index
    %329 = vector.load %arg37[%c0_174, %c0_175] : memref<32x64xf32, #tpu.memory_space<vmem>>, vector<32x64xf32>
    %c0_176 = arith.constant 0 : index
    %c0_177 = arith.constant 0 : index
    %330 = vector.load %arg38[%c0_176, %c0_177] : memref<1x64xf32, #tpu.memory_space<vmem>>, vector<1x64xf32>
    %c0_178 = arith.constant 0 : index
    %c0_179 = arith.constant 0 : index
    %331 = vector.load %arg39[%c0_178, %c0_179] : memref<64x64xf32, #tpu.memory_space<vmem>>, vector<64x64xf32>
    %c0_180 = arith.constant 0 : index
    %c0_181 = arith.constant 0 : index
    %332 = vector.load %arg40[%c0_180, %c0_181] : memref<1x64xf32, #tpu.memory_space<vmem>>, vector<1x64xf32>
    %cst_182 = arith.constant dense<0.000000e+00> : vector<32x64xf32>
    %333 = tpu.matmul %328, %329, %cst_182 {dimension_numbers = #tpu.dot_dimension_numbers<[1], [0], [0], [1], [0, 0, 1, 1], [], []>} : vector<32x32xf32>, vector<32x64xf32>, vector<32x64xf32> -> vector<32x64xf32>
    %334 = vector.broadcast %330 : vector<1x64xf32> to vector<32x64xf32>
    %335 = arith.addf %333, %334 : vector<32x64xf32>
    %cst_183 = arith.constant 0.000000e+00 : f32
    %336 = vector.broadcast %cst_183 : f32 to vector<32x64xf32>
    %337 = arith.maximumf %335, %336 : vector<32x64xf32>
    %cst_184 = arith.constant dense<0.000000e+00> : vector<32x64xf32>
    %338 = tpu.matmul %337, %331, %cst_184 {dimension_numbers = #tpu.dot_dimension_numbers<[1], [0], [0], [1], [0, 0, 1, 1], [], []>} : vector<32x64xf32>, vector<64x64xf32>, vector<32x64xf32> -> vector<32x64xf32>
    %339 = vector.broadcast %332 : vector<1x64xf32> to vector<32x64xf32>
    %340 = arith.addf %338, %339 : vector<32x64xf32>
    %cst_185 = arith.constant 0.000000e+00 : f32
    %341 = vector.broadcast %cst_185 : f32 to vector<32x64xf32>
    %342 = arith.maximumf %340, %341 : vector<32x64xf32>
    %c0_186 = arith.constant 0 : index
    %c0_187 = arith.constant 0 : index
    %343 = vector.load %arg41[%c0_186, %c0_187] : memref<32x64xf32, #tpu.memory_space<vmem>>, vector<32x64xf32>
    %c0_188 = arith.constant 0 : index
    %c0_189 = arith.constant 0 : index
    %344 = vector.load %arg42[%c0_188, %c0_189] : memref<1x64xf32, #tpu.memory_space<vmem>>, vector<1x64xf32>
    %cst_190 = arith.constant dense<0.000000e+00> : vector<32x64xf32>
    %345 = tpu.matmul %328, %343, %cst_190 {dimension_numbers = #tpu.dot_dimension_numbers<[1], [0], [0], [1], [0, 0, 1, 1], [], []>} : vector<32x32xf32>, vector<32x64xf32>, vector<32x64xf32> -> vector<32x64xf32>
    %346 = vector.broadcast %344 : vector<1x64xf32> to vector<32x64xf32>
    %347 = arith.addf %345, %346 : vector<32x64xf32>
    %348 = arith.addf %342, %347 : vector<32x64xf32>
    %cst_191 = arith.constant 0.000000e+00 : f32
    %349 = vector.broadcast %cst_191 : f32 to vector<32x64xf32>
    %350 = arith.maximumf %348, %349 : vector<32x64xf32>
    %c0_192 = arith.constant 0 : index
    %c0_193 = arith.constant 0 : index
    %351 = vector.load %arg43[%c0_192, %c0_193] : memref<1x64xf32, #tpu.memory_space<vmem>>, vector<1x64xf32>
    %c0_194 = arith.constant 0 : index
    %c0_195 = arith.constant 0 : index
    %352 = vector.load %arg44[%c0_194, %c0_195] : memref<1x64xf32, #tpu.memory_space<vmem>>, vector<1x64xf32>
    %c0_196 = arith.constant 0 : index
    %c0_197 = arith.constant 0 : index
    %353 = vector.load %arg45[%c0_196, %c0_197] : memref<32x64xf32, #tpu.memory_space<vmem>>, vector<32x64xf32>
    %c0_198 = arith.constant 0 : index
    %c0_199 = arith.constant 0 : index
    %354 = vector.load %arg46[%c0_198, %c0_199] : memref<2x32xf32, #tpu.memory_space<vmem>>, vector<2x32xf32>
    %c0_200 = arith.constant 0 : index
    %c0_201 = arith.constant 0 : index
    %355 = vector.load %arg47[%c0_200, %c0_201] : memref<64x16xf32, #tpu.memory_space<vmem>>, vector<64x16xf32>
    %c0_202 = arith.constant 0 : index
    %c0_203 = arith.constant 0 : index
    %356 = vector.load %arg48[%c0_202, %c0_203] : memref<1x1xf32, #tpu.memory_space<vmem>>, vector<1x1xf32>
    %cst_204 = arith.constant dense<0.000000e+00> : vector<64xf32>
    %357 = vector.multi_reduction <add>, %350, %cst_204 [0] : vector<32x64xf32> to vector<64xf32>
    %358 = vector.shape_cast %357 : vector<64xf32> to vector<1x64xf32>
    %cst_205 = arith.constant 3.200000e+01 : f32
    %359 = vector.broadcast %cst_205 : f32 to vector<1x64xf32>
    %360 = arith.divf %358, %359 : vector<1x64xf32>
    %361 = vector.broadcast %360 : vector<1x64xf32> to vector<32x64xf32>
    %362 = arith.subf %350, %361 : vector<32x64xf32>
    %363 = arith.mulf %362, %362 : vector<32x64xf32>
    %cst_206 = arith.constant dense<0.000000e+00> : vector<64xf32>
    %364 = vector.multi_reduction <add>, %363, %cst_206 [0] : vector<32x64xf32> to vector<64xf32>
    %365 = vector.shape_cast %364 : vector<64xf32> to vector<1x64xf32>
    %cst_207 = arith.constant 3.200000e+01 : f32
    %366 = vector.broadcast %cst_207 : f32 to vector<1x64xf32>
    %367 = arith.divf %365, %366 : vector<1x64xf32>
    %368 = vector.broadcast %360 : vector<1x64xf32> to vector<32x64xf32>
    %369 = arith.subf %350, %368 : vector<32x64xf32>
    %cst_208 = arith.constant 9.99999974E-6 : f32
    %370 = vector.broadcast %cst_208 : f32 to vector<1x64xf32>
    %371 = arith.addf %367, %370 : vector<1x64xf32>
    %372 = math.rsqrt %371 : vector<1x64xf32>
    %373 = vector.broadcast %372 : vector<1x64xf32> to vector<32x64xf32>
    %374 = arith.mulf %369, %373 : vector<32x64xf32>
    %375 = vector.broadcast %351 : vector<1x64xf32> to vector<32x64xf32>
    %376 = arith.mulf %374, %375 : vector<32x64xf32>
    %377 = vector.broadcast %352 : vector<1x64xf32> to vector<32x64xf32>
    %378 = arith.addf %376, %377 : vector<32x64xf32>
    %cst_209 = arith.constant 0.000000e+00 : f32
    %379 = vector.broadcast %cst_209 : f32 to vector<32x64xf32>
    %380 = arith.maximumf %378, %379 : vector<32x64xf32>
    %381 = arith.mulf %380, %353 : vector<32x64xf32>
    %cst_210 = arith.constant dense<0.000000e+00> : vector<2x64xf32>
    %382 = tpu.matmul %354, %381, %cst_210 {dimension_numbers = #tpu.dot_dimension_numbers<[1], [0], [0], [1], [0, 0, 1, 1], [], []>} : vector<2x32xf32>, vector<32x64xf32>, vector<2x64xf32> -> vector<2x64xf32>
    %cst_211 = arith.constant dense<0.000000e+00> : vector<2x16xf32>
    %383 = tpu.matmul %382, %355, %cst_211 {dimension_numbers = #tpu.dot_dimension_numbers<[1], [0], [0], [1], [0, 0, 1, 1], [], []>} : vector<2x64xf32>, vector<64x16xf32>, vector<2x16xf32> -> vector<2x16xf32>
    %384 = vector.broadcast %356 : vector<1x1xf32> to vector<2x16xf32>
    %385 = arith.addf %383, %384 : vector<2x16xf32>
    %cst_212 = arith.constant 0.000000e+00 : f32
    %386 = vector.broadcast %cst_212 : f32 to vector<2x16xf32>
    %387 = arith.subf %386, %385 : vector<2x16xf32>
    %388 = math.exp %387 : vector<2x16xf32>
    %cst_213 = arith.constant 1.000000e+00 : f32
    %389 = vector.broadcast %cst_213 : f32 to vector<2x16xf32>
    %390 = arith.addf %389, %388 : vector<2x16xf32>
    %391 = tpu.reciprocal %390 {approx = true} : vector<2x16xf32> -> vector<2x16xf32>
    %c0_214 = arith.constant 0 : index
    %c0_215 = arith.constant 0 : index
    %392 = vector.load %arg49[%c0_214, %c0_215] : memref<2x16xf32, #tpu.memory_space<vmem>>, vector<2x16xf32>
    tpu.vector_store %arg49[%c0_214, %c0_215], %391 {strides = array<i32>} : memref<2x16xf32, #tpu.memory_space<vmem>>, vector<2x16xf32>,
    return
  }
}

</mosaic_0001>

<bundles_post_ra>
// kernel: squeeze.13
= control target key start
LH: loop header
LB: loop body
LE: loop exit
PB: predicated region body
PF: predicated region fallthrough
CT: control target
= control target key end

     0   :  { %s37_s8 = smov 80   ;;  %vm7_vm0 = vcmask 130048   ;;  %s38_s9 = smov 96   ;;  %s55_s0 = inlined_call_operand.vmem [shape: f32[64], index: 0, kind: input, shape index: {}]   ;;  %s56_s1 = inlined_call_operand.vmem [shape: f32[4,16], index: 1, kind: output, shape index: {}]  }
   0x1   :  { %v4_v0 = vld [vmem:[%s55_s0] sm:$0x1]  ;;  %s36_s0 = smov 112  }
   0x2   :  { %5 = vst [vmem:[#allocation1] sm:$0x1] %v4_v0 }
   0x9   :  { %v9_v1 = vld [vmem:[#allocation1] sm:$0x1]  }
   0xa   :  { %v21_v2 = vld [vmem:[#allocation1] sm:$0x1]   ;;  %10 = vrot.lane.b32.xlu0 %v9_v1, %s36_s0 }
   0xb   :  { %22 = vrot.lane.b32.xlu1 %v21_v2, %s37_s8  ;;  %v6_v3 = vld [vmem:[#allocation1] sm:$0x1]  }
   0xc   :  { %v15_v4 = vld [vmem:[#allocation1] sm:$0x1]   ;;  %8 = vst.msk [vmem:[#allocation0] sm:$0x1] %vm7_vm0, %v6_v3  }
   0xe   :  { %16 = vrot.lane.b32.xlu0 %v15_v4, %s38_s9 }
  0x7c   :  { %v11_v5 = vpop.permute.xlu0 %10  }
  0x7d   :  { %v23_v6 = vpop.permute.xlu1 %22   ;;  %14 = vst.msk [vmem:[#allocation0 + $0x1] sm:$0x1] %vm7_vm0, %v11_v5  }
  0x7e   :  { %26 = vst.msk [vmem:[#allocation0 + $0x3] sm:$0x1] %vm7_vm0, %v23_v6  }
  0x80   :  { %v17_v7 = vpop.permute.xlu0 %16  }
  0x81   :  { %20 = vst.msk [vmem:[#allocation0 + $0x2] sm:$0x1] %vm7_vm0, %v17_v7  }
  0x88   :  { %v30_v8 = vld [vmem:[#allocation0] sm:$0xf] }
  0x89   :  { %32 = vst [vmem:[%s56_s1] sm:$0xf] %v30_v8 }

// kernel: tcn_model_forward.1
= control target key start
LH: loop header
LB: loop body
LE: loop exit
PB: predicated region body
PF: predicated region fallthrough
CT: control target
= control target key end

     0   :  { %s3810_s6 = smov 1   ;;  %s3811_s10 = smov 2   ;;  %v222_v6 = vlaneseq  ;;  %vm312_vm2 = vcmask 31744   ;;  %vm323_vm4 = vcmask 64512   ;;  %vm477_vm5 = vcmask 1041408   ;;  %s4335_s0 = inlined_call_operand.smem [shape: u32[50], index: -1, kind: input, shape index: {}] }
   0x1   :  { %s1_s5 = sld [smem:[%s4335_s0]]   ;;  %s3812_s14 = smov 4   ;;  %vm586_vm6 = vcmask 1043456   ;;  %vm453_vm7 = vcmask 7168   ;;  %vm464_vm8 = vcmask 15360   ;;  %vm1000_vm9 = vcmask 1040384  }
   0x2   :  { %s3130_s9 = sld [smem:[%s4335_s0 + %s3810_s6]]   ;;  %v3895_v7 = vshrl.u32 %v222_v6, 7  ;;  %s3813_s15 = smov 3  }
   0x3   :  { %s3131_s13 = sld [smem:[%s4335_s0 + %s3811_s10]]   ;;  %s3814_s19 = smov 5  }
   0x4   :  { %v230_v8 = vadd.s32 16, %v3895_v7  ;;  %v3901_v11 = vand.u32 15, %v3895_v7  ;;  %vm224_vm0 = vcmp.lt.s32.totalorder %v3895_v7, 1  ;;  %s3132_s18 = sld [smem:[%s4335_s0 + %s3813_s15]]   ;;  %s3815_s26 = smov 6   ;;  %vm691_vm10 = vcmp.lt.s32.totalorder %v3895_v7, 2 }
   0x5   :  { %s3134_s22 = sld [smem:[%s4335_s0 + %s3814_s19]]   ;;  %s3816_s30 = smov 7   ;;  %vm1105_vm13 = vcmp.lt.s32.totalorder %v3895_v7, 4 }
   0x6   :  { %v3906_v14 = vand.u32 15, %v230_v8  ;;  %vm280_vm1 = vcmp.ge.s32.totalorder %v3901_v11, 1  ;;  %s3133_s25 = sld [smem:[%s4335_s0 + %s3812_s14]]   ;;  %s3817_s4 = smov 11   ;;  %vm696_vm11 = vcmp.ge.s32.totalorder %v3901_v11, 2  ;;  %vm1110_vm14 = vcmp.ge.s32.totalorder %v3901_v11, 4 }
   0x7   :  { %v3879_v0 = vld [vmem:[%s1_s5] sm:$0xff]  ;;  %v3881_v1 = vld [vmem:[%s1_s5 + $0x10] sm:$0xff]  ;;  %v3887_v3 = vld [vmem:[%s1_s5 + $0x8] sm:$0xff]  ;;  %s3135_s29 = sld [smem:[%s4335_s0 + %s3815_s26]]   ;;  %s3822_s26 = smov 12  }
   0x8   :  { %300 = vrot.lane.b32.xlu0 %v3879_v0, %s3812_s14  ;;  %304 = vrot.lane.b32.xlu1 %v3881_v1, %s3812_s14  ;;  %v214_v2 = vld [vmem:[%s3130_s9] sm:$0xff]  ;;  %v3889_v4 = vld [vmem:[%s1_s5 + $0x18] sm:$0xff]  ;;  %v218_v9 = vrot.slane %v3879_v0, 7  ;;  %v220_v12 = vrot.slane %v3881_v1, 7  ;;  %v219_v13 = vrot.slane %v3887_v3, 7  ;;  %vm282_vm3 = vcmp.ge.s32.totalorder %v3906_v14, 1  ;;  %s3136_s3 = sld [smem:[%s4335_s0 + %s3816_s30]]  }
   0x9   :  { %3436 = vmatprep.subr.mxu0 %v214_v2  ;;  %v104_v5 = vstv %s3131_s13  ;;  %v221_v10 = vrot.slane %v3889_v4, 7  ;;  %s3140_s8 = sld [smem:[%s4335_s0 + %s3817_s4]]   ;;  %vm698_vm12 = vcmp.ge.s32.totalorder %v3906_v14, 2  ;;  %s3819_s13 = smov 8   ;;  %vm1112_vm15 = vcmp.ge.s32.totalorder %v3906_v14, 4 }
   0xa   :  { %3437 = vmatpush3.msra.mxu0 %v214_v2  ;;  %105 = vst [vmem:[#allocation2] sm:$0x1] %v104_v5  ;;  %v226_v17 = vsel %vm224_vm0, %v219_v13, %v220_v12  ;;  %v227_v22 = vsel %vm224_vm0, %v218_v9, %v219_v13  ;;  %v216_v29 = vld [vmem:[%s3132_s18] sm:$0x3]  ;;  %s3137_s17 = sld [smem:[%s4335_s0 + %s3819_s13]]   ;;  %s3820_s18 = smov 13  }
   0xb   :  { %v228_v15 = vsel %vm224_vm0, %v221_v10, %v218_v9  ;;  %v294_v21 = vsel %vm282_vm3, %v226_v17, 0.0  ;;  %v225_v26 = vsel %vm224_vm0, %v220_v12, %v221_v10  ;;  %3444 = vmatprep.subr.msk.mxu0 %vm477_vm5, %v216_v29  ;;  %3748 = vmatprep.subr.msk.mxu1 %vm477_vm5, %v216_v29  ;;  %v570_v30 = vld [vmem:[%s3134_s22] sm:$0xf]  ;;  %s3142_s21 = sld [smem:[%s4335_s0 + %s3820_s18]]   ;;  %s3821_s22 = smov 10  }
   0xc   :  { %302 = vrot.lane.b32.xlu0 %v3887_v3, %s3812_s14  ;;  %306 = vrot.lane.b32.xlu1 %v3889_v4, %s3812_s14  ;;  %v292_v16 = vsel %vm280_vm1, %v228_v15, 0.0  ;;  %v106_v48 = vstv %s3133_s25  ;;  %s3139_s25 = sld [smem:[%s4335_s0 + %s3821_s22]]   ;;  %s3823_s30 = smov 17  }
   0xd   :  { %3749 = vmatpush3.msk.msra.mxu1 %vm477_vm5, %v216_v29  ;;  %107 = vst [vmem:[#allocation3] sm:$0x1] %v106_v48  ;;  %v108_v63 = vstv %s3135_s29  ;;  %s3141_s29 = sld [smem:[%s4335_s0 + %s3822_s26]]   ;;  %s3827_s18 = smov 16  }
   0xe   :  { %109 = vst [vmem:[#allocation4] sm:$0x1] %v108_v63  ;;  %s3828_s22 = smov 18   ;;  %s3829_s26 = smov 23  }
   0xf   :  { %s3833_s9 = smov 29   ;;  %s3834_s16 = smov 27  }
  0x10   :  { %s3158_s15 = sld [smem:[%s4335_s0 + %s3833_s9]]   ;;  %s3835_s20 = smov 22  }
  0x11   :  { %v3179_v31 = vld [vmem:[#allocation2] ss:$0 sm:$0xff]  ;;  %s3156_s19 = sld [smem:[%s4335_s0 + %s3834_s16]]   ;;  %s3836_s24 = smov 24  }
  0x12   :  { %s3151_s23 = sld [smem:[%s4335_s0 + %s3835_s20]]   ;;  %s3837_s28 = smov 26  }
  0x13   :  { %s3153_s27 = sld [smem:[%s4335_s0 + %s3836_s24]]   ;;  %s3838_s1 = smov 31  }
  0x14   :  { %s3839_s4 = smov 35   ;;  %s3848_s9 = smov 36  }
  0x15   :  { %v3190_v6 = vld [vmem:[#allocation4] ss:$0 sm:$0xff]  ;;  %s3849_s16 = smov 38   ;;  %s3853_s20 = smov 47  }
  0x16   :  { %s3854_s24 = smov 40  }
  0x7a   :  { %v301_v18 = vpop.permute.xlu0 %300  ;;  %v305_v19 = vpop.permute.xlu1 %304 }
  0x7b   :  { %v313_v20 = vsel %vm312_vm2, %v292_v16, %v301_v18  ;;  %v315_v23 = vsel %vm312_vm2, %v294_v21, %v305_v19 }
  0x7c   :  { %3438 = vmatprep.mubr.msk.f32.mxu0 %vm323_vm4, %v313_v20  ;;  %v984_v20 = vld [vmem:[%s3140_s8] sm:$0x1]  ;;  %s3825_s8 = smov 14  }
  0x7d   :  { %s3143_s11 = sld [smem:[%s4335_s0 + %s3825_s8]]   ;;  %s3840_s8 = smov 33  }
  0x7e   :  { %v303_v24 = vpop.permute.xlu0 %302  ;;  %v307_v25 = vpop.permute.xlu1 %306 }
  0x7f   :  { %v314_v27 = vsel %vm312_vm2, %v227_v22, %v303_v24  ;;  %v316_v28 = vsel %vm312_vm2, %v225_v26, %v307_v25 }
  0x80   :  { %3439 = vmatmul.mubr.msk.f32.vlgmr.msra.gmra.mrb[0].mxu0 %vm323_vm4, %v314_v27 }
  0x81   :  { %3441 = vmatprep.mubr.msk.f32.mxu0 %vm323_vm4, %v315_v23  ;;  %3445 = vmatpush3.msk.msra.mxu0 %vm477_vm5, %v216_v29 }
  0x82   :  { %3452 = vmatprep.subr.msk.mxu0 %vm586_vm6, %v570_v30 }
  0x84   :  { %3442 = vmatmul.mubr.msk.f32.gmra.mrb[2].mxu0 %vm323_vm4, %v316_v28 }
 0x153   :  { %v3440_v32 = vpop.f32.mrb[0].mxu0 }
 0x154   :  { %v408_v33 = vadd.f32 %v3440_v32, %v3179_v31  ;;  %v402_v34 = vpop.f32.mrb[1].mxu0 }
 0x155   :  { %v403_v35 = vadd.f32 %v3179_v31, %v402_v34 }
 0x156   :  { %v422_v36 = vmax.f32 %v408_v33, 0.0 }
 0x157   :  { %v421_v37 = vmax.f32 %v403_v35, 0.0  ;;  %v3443_v38 = vpop.f32.mrb[2].mxu0 }
 0x158   :  { %v426_v39 = vrot.slane %v422_v36, 7  ;;  %v418_v40 = vadd.f32 %v3443_v38, %v3179_v31  ;;  %443 = vrot.lane.b32.xlu1 %v422_v36, %s3810_s6  ;;  %v412_v41 = vpop.f32.mrb[3].mxu0 }
 0x159   :  { %v425_v42 = vrot.slane %v421_v37, 7  ;;  %v413_v43 = vadd.f32 %v3179_v31, %v412_v41  ;;  %441 = vrot.lane.b32.xlu0 %v421_v37, %s3810_s6 }
 0x15a   :  { %v424_v44 = vmax.f32 %v418_v40, 0.0 }
 0x15b   :  { %v423_v45 = vmax.f32 %v413_v43, 0.0  ;;  %v431_v46 = vsel %vm224_vm0, %v425_v42, %v426_v39 }
 0x15c   :  { %v428_v47 = vrot.slane %v424_v44, 7  ;;  %447 = vrot.lane.b32.xlu1 %v424_v44, %s3810_s6 }
 0x15d   :  { %v427_v49 = vrot.slane %v423_v45, 7  ;;  %445 = vrot.lane.b32.xlu0 %v423_v45, %s3810_s6 }
 0x15e   :  { %v432_v50 = vsel %vm224_vm0, %v428_v47, %v425_v42 }
 0x15f   :  { %v429_v51 = vsel %vm224_vm0, %v427_v49, %v428_v47  ;;  %v430_v52 = vsel %vm224_vm0, %v426_v39, %v427_v49  ;;  %v433_v55 = vsel %vm280_vm1, %v432_v50, 0.0  ;;  %vm1685_vm0 = vcmask 130048  }
 0x160   :  { %v435_v60 = vsel %vm282_vm3, %v430_v52, 0.0  ;;  %vm2340_vm1 = vcmask 261120   ;;  %vm3851_vm3 = vmmov 0  }
 0x1ca   :  { %v444_v53 = vpop.permute.xlu1 %443 }
 0x1cb   :  { %v442_v54 = vpop.permute.xlu0 %441  ;;  %v455_v57 = vsel %vm453_vm7, %v431_v46, %v444_v53 }
 0x1cc   :  { %v454_v56 = vsel %vm453_vm7, %v433_v55, %v442_v54  ;;  %v3196_v54 = vld [vmem:[%s3137_s17] ss:$0 sm:$0xff] }
 0x1cd   :  { %3446 = vmatprep.mubr.msk.f32.mxu0 %vm464_vm8, %v454_v56 }
 0x1ce   :  { %v448_v58 = vpop.permute.xlu1 %447  ;;  %3447 = vmatmul.mubr.msk.f32.vlgmr.msra.gmra.mrb[4].mxu0 %vm464_vm8, %v455_v57 }
 0x1cf   :  { %v446_v59 = vpop.permute.xlu0 %445  ;;  %3453 = vmatpush3.msk.msra.mxu0 %vm586_vm6, %v570_v30  ;;  %3454 = vmatprep.mubr.msk.f32.mxu0 %vm312_vm2, %v3879_v0  ;;  %v457_v62 = vsel %vm453_vm7, %v429_v51, %v448_v58  ;;  %v683_v0 = vld [vmem:[%s3136_s3] sm:$0x3]  ;;  %s3146_s3 = sld [smem:[%s4335_s0 + %s3823_s30]]  }
 0x1d0   :  { %v456_v61 = vsel %vm453_vm7, %v435_v60, %v446_v59  ;;  %3460 = vmatprep.subr.msk.mxu1 %vm477_vm5, %v683_v0  ;;  %s3155_s30 = sld [smem:[%s4335_s0 + %s3837_s28]]   ;;  %s3855_s28 = smov 42  }
 0x1d1   :  { %3449 = vmatprep.mubr.msk.f32.mxu1 %vm464_vm8, %v456_v61 }
 0x1d2   :  { %3450 = vmatmul.mubr.msk.f32.vlgmr.msra.gmra.mrb[0].mxu1 %vm464_vm8, %v457_v62  ;;  %3455 = vmatmul.mubr.msk.f32.vlgmr.msra.gmra.mrb[6].mxu0 %vm312_vm2, %v3887_v3 }
 0x1d3   :  { %3457 = vmatprep.mubr.msk.f32.mxu0 %vm312_vm2, %v3881_v1  ;;  %3461 = vmatpush3.msk.msra.mxu1 %vm477_vm5, %v683_v0  ;;  %v3184_v1 = vld [vmem:[#allocation3] ss:$0 sm:$0xff] }
 0x1d4   :  { %3476 = vmatprep.subr.msk.mxu1 %vm1000_vm9, %v984_v20 }
 0x1d6   :  { %3458 = vmatmul.mubr.msk.f32.gmra.mrb[8].mxu0 %vm312_vm2, %v3889_v4 }
 0x2a1   :  { %v3448_v2 = vpop.f32.mrb[4].mxu0 }
 0x2a2   :  { %v553_v3 = vadd.f32 %v3448_v2, %v3184_v1  ;;  %v547_v4 = vpop.f32.mrb[5].mxu0 }
 0x2a3   :  { %v548_v5 = vadd.f32 %v3184_v1, %v547_v4 }
 0x2a4   :  { %v567_v10 = vmax.f32 %v553_v3, 0.0 }
 0x2a5   :  { %v3451_v8 = vpop.f32.mrb[0].mxu1  ;;  %v3456_v9 = vpop.f32.mrb[6].mxu0  ;;  %v566_v17 = vmax.f32 %v548_v5, 0.0 }
 0x2a6   :  { %v563_v12 = vadd.f32 %v3451_v8, %v3184_v1  ;;  %v662_v13 = vadd.f32 %v3456_v9, %v3190_v6  ;;  %v557_v15 = vpop.f32.mrb[1].mxu1  ;;  %v656_v16 = vpop.f32.mrb[7].mxu0 }
 0x2a7   :  { %v558_v18 = vadd.f32 %v3184_v1, %v557_v15  ;;  %v657_v19 = vadd.f32 %v3190_v6, %v656_v16 }
 0x2a8   :  { %v676_v21 = vadd.f32 %v662_v13, %v567_v10  ;;  %v569_v24 = vmax.f32 %v563_v12, 0.0 }
 0x2a9   :  { %v675_v22 = vadd.f32 %v657_v19, %v566_v17  ;;  %v3459_v23 = vpop.f32.mrb[8].mxu0  ;;  %v568_v28 = vmax.f32 %v558_v18, 0.0 }
 0x2aa   :  { %v680_v25 = vmax.f32 %v676_v21, 0.0  ;;  %v672_v26 = vadd.f32 %v3459_v23, %v3190_v6  ;;  %v666_v27 = vpop.f32.mrb[9].mxu0 }
 0x2ab   :  { %v679_v29 = vmax.f32 %v675_v22, 0.0  ;;  %v667_v30 = vadd.f32 %v3190_v6, %v666_v27 }
 0x2ac   :  { %v678_v31 = vadd.f32 %v672_v26, %v569_v24  ;;  %710 = vrot.lane.b32.xlu1 %v680_v25, %s3810_s6  ;;  %v688_v37 = vrot.slane %v680_v25, 6 }
 0x2ad   :  { %v677_v32 = vadd.f32 %v667_v30, %v568_v28  ;;  %708 = vrot.lane.b32.xlu0 %v679_v29, %s3810_s6  ;;  %v687_v36 = vrot.slane %v679_v29, 6  ;;  %v1097_v28 = vld [vmem:[%s3142_s21] sm:$0xf]  ;;  %s3145_s21 = sld [smem:[%s4335_s0 + %s3827_s18]]   ;;  %s3842_s18 = smov 30  }
 0x2ae   :  { %v682_v33 = vmax.f32 %v678_v31, 0.0  ;;  %v3208_v30 = vld [vmem:[%s3141_s29] ss:$0 sm:$0xff]  ;;  %s3152_s29 = sld [smem:[%s4335_s0 + %s3829_s26]]   ;;  %s3844_s26 = smov 37  }
 0x2af   :  { %v681_v34 = vmax.f32 %v677_v32, 0.0  ;;  %v694_v43 = vsel %vm691_vm10, %v687_v36, %v688_v37 }
 0x2b0   :  { %714 = vrot.lane.b32.xlu1 %v682_v33, %s3810_s6  ;;  %v690_v35 = vrot.slane %v682_v33, 6 }
 0x2b1   :  { %712 = vrot.lane.b32.xlu0 %v681_v34, %s3810_s6  ;;  %v689_v38 = vrot.slane %v681_v34, 6  ;;  %s3818_s6 = smov 9  }
 0x2b2   :  { %v695_v39 = vsel %vm691_vm10, %v690_v35, %v687_v36  ;;  %s3138_s12 = sld [smem:[%s4335_s0 + %s3818_s6]]  }
 0x2b3   :  { %v700_v42 = vsel %vm696_vm11, %v695_v39, 0.0  ;;  %v693_v45 = vsel %vm691_vm10, %v688_v37, %v689_v38  ;;  %v692_v50 = vsel %vm691_vm10, %v689_v38, %v690_v35  ;;  %v3220_v14 = vld [vmem:[%s3145_s21] ss:$0 sm:$0xff]  ;;  %s3159_s21 = sld [smem:[%s4335_s0 + %s3842_s18]]   ;;  %s3861_s18 = smov 48  }
 0x2b4   :  { %v702_v48 = vsel %vm698_vm12, %v693_v45, 0.0 }
 0x2b8   :  { %v685_v53 = vld [vmem:[%s3138_s12] sm:$0xf]  ;;  %s3826_s12 = smov 19  }
 0x2b9   :  { %3468 = vmatprep.subr.msk.mxu0 %vm586_vm6, %v685_v53  ;;  %s3148_s17 = sld [smem:[%s4335_s0 + %s3826_s12]]   ;;  %s3841_s12 = smov 28  }
 0x2ba   :  { %3469 = vmatpush3.msk.msra.mxu0 %vm586_vm6, %v685_v53 }
 0x2bb   :  { %3484 = vmatprep.subr.msk.mxu0 %vm586_vm6, %v1097_v28 }
 0x2bf   :  { %v1507_v11 = vld [vmem:[%s3148_s17] sm:$0xff]  ;;  %s3157_s17 = sld [smem:[%s4335_s0 + %s3841_s12]]   ;;  %s3859_s12 = smov 46  }
 0x31e   :  { %v711_v40 = vpop.permute.xlu1 %710 }
 0x31f   :  { %v709_v41 = vpop.permute.xlu0 %708  ;;  %v721_v46 = vsel %vm453_vm7, %v694_v43, %v711_v40  ;;  %v1395_v40 = vld [vmem:[%s3146_s3] sm:$0x3]  ;;  %s3831_s3 = smov 20  }
 0x320   :  { %v720_v44 = vsel %vm453_vm7, %v700_v42, %v709_v41  ;;  %s3149_s5 = sld [smem:[%s4335_s0 + %s3831_s3]]   ;;  %s3846_s3 = smov 39  }
 0x321   :  { %3462 = vmatprep.mubr.msk.f32.mxu1 %vm464_vm8, %v720_v44 }
 0x322   :  { %v715_v47 = vpop.permute.xlu1 %714  ;;  %3463 = vmatmul.mubr.msk.f32.vlgmr.msra.gmra.mrb[2].mxu1 %vm464_vm8, %v721_v46 }
 0x323   :  { %v713_v49 = vpop.permute.xlu0 %712  ;;  %3477 = vmatpush3.msk.msra.mxu1 %vm1000_vm9, %v984_v20  ;;  %v723_v52 = vsel %vm453_vm7, %v692_v50, %v715_v47 }
 0x324   :  { %v722_v51 = vsel %vm453_vm7, %v702_v48, %v713_v49 }
 0x325   :  { %3465 = vmatprep.mubr.msk.f32.mxu1 %vm464_vm8, %v722_v51 }
 0x326   :  { %3466 = vmatmul.mubr.msk.f32.gmra.mrb[4].mxu1 %vm464_vm8, %v723_v52 }
 0x327   :  { %3478 = vmatprep.mubr.msk.f32.mxu1 %vm453_vm7, %v679_v29  ;;  %v3202_v29 = vld [vmem:[%s3139_s25] ss:$0 sm:$0xff]  ;;  %s3147_s25 = sld [smem:[%s4335_s0 + %s3828_s22]]   ;;  %s3843_s22 = smov 32  }
 0x32a   :  { %3479 = vmatmul.mubr.msk.f32.vlgmr.msra.gmra.mrb[6].mxu1 %vm453_vm7, %v680_v25 }
 0x32b   :  { %3481 = vmatprep.mubr.msk.f32.mxu1 %vm453_vm7, %v681_v34 }
 0x32e   :  { %3482 = vmatmul.mubr.msk.f32.gmra.mrb[8].mxu1 %vm453_vm7, %v682_v33 }
 0x3f5   :  { %v3464_v55 = vpop.f32.mrb[2].mxu1 }
 0x3f6   :  { %v817_v56 = vadd.f32 %v3464_v55, %v3196_v54  ;;  %v811_v57 = vpop.f32.mrb[3].mxu1 }
 0x3f7   :  { %v812_v58 = vadd.f32 %v3196_v54, %v811_v57 }
 0x3f8   :  { %v831_v59 = vmax.f32 %v817_v56, 0.0 }
 0x3f9   :  { %v830_v60 = vmax.f32 %v812_v58, 0.0  ;;  %v3467_v61 = vpop.f32.mrb[4].mxu1 }
 0x3fa   :  { %v835_v62 = vrot.slane %v831_v59, 6  ;;  %v827_v63 = vadd.f32 %v3467_v61, %v3196_v54  ;;  %860 = vrot.lane.b32.xlu1 %v831_v59, %s3811_s10  ;;  %v821_v0 = vpop.f32.mrb[5].mxu1 }
 0x3fb   :  { %v834_v1 = vrot.slane %v830_v60, 6  ;;  %v822_v2 = vadd.f32 %v3196_v54, %v821_v0  ;;  %858 = vrot.lane.b32.xlu0 %v830_v60, %s3811_s10 }
 0x3fc   :  { %v833_v3 = vmax.f32 %v827_v63, 0.0 }
 0x3fd   :  { %v832_v4 = vmax.f32 %v822_v2, 0.0  ;;  %v3480_v5 = vpop.f32.mrb[6].mxu1  ;;  %v840_v6 = vsel %vm691_vm10, %v834_v1, %v835_v62 }
 0x3fe   :  { %v837_v8 = vrot.slane %v833_v3, 6  ;;  %864 = vrot.lane.b32.xlu1 %v833_v3, %s3811_s10  ;;  %v1070_v9 = vpop.f32.mrb[7].mxu1  ;;  %v1076_v35 = vadd.f32 %v3480_v5, %v3208_v30 }
 0x3ff   :  { %v836_v10 = vrot.slane %v832_v4, 6  ;;  %862 = vrot.lane.b32.xlu0 %v832_v4, %s3811_s10  ;;  %v1071_v37 = vadd.f32 %v3208_v30, %v1070_v9 }
 0x400   :  { %v841_v12 = vsel %vm691_vm10, %v837_v8, %v834_v1 }
 0x401   :  { %v3483_v13 = vpop.f32.mrb[8].mxu1  ;;  %v838_v15 = vsel %vm691_vm10, %v836_v10, %v837_v8  ;;  %v839_v16 = vsel %vm691_vm10, %v835_v62, %v836_v10  ;;  %v850_v20 = vsel %vm696_vm11, %v841_v12, 0.0 }
 0x402   :  { %v1080_v17 = vpop.f32.mrb[9].mxu1  ;;  %v852_v24 = vsel %vm698_vm12, %v839_v16, 0.0  ;;  %v1086_v46 = vadd.f32 %v3483_v13, %v3208_v30  ;;  %v3214_v13 = vld [vmem:[%s3143_s11] ss:$0 sm:$0xff]  ;;  %s4219_s11 = sld [smem:[%s4335_s0 + %s3840_s8]]   ;;  %s3858_s8 = smov 45  }
 0x403   :  { %v1081_v49 = vadd.f32 %v3208_v30, %v1080_v17 }
 0x46c   :  { %v861_v18 = vpop.permute.xlu1 %860 }
 0x46d   :  { %v859_v19 = vpop.permute.xlu0 %858  ;;  %v871_v22 = vsel %vm464_vm8, %v840_v6, %v861_v18 }
 0x46e   :  { %v870_v21 = vsel %vm464_vm8, %v850_v20, %v859_v19 }
 0x46f   :  { %3470 = vmatprep.mubr.msk.f32.mxu0 %vm312_vm2, %v870_v21 }
 0x470   :  { %v865_v23 = vpop.permute.xlu1 %864  ;;  %3471 = vmatmul.mubr.msk.f32.vlgmr.msra.gmra.mrb[10].mxu0 %vm312_vm2, %v871_v22 }
 0x471   :  { %v863_v25 = vpop.permute.xlu0 %862  ;;  %v873_v27 = vsel %vm464_vm8, %v838_v15, %v865_v23  ;;  %3485 = vmatpush3.msk.msra.mxu0 %vm586_vm6, %v1097_v28 }
 0x472   :  { %v872_v26 = vsel %vm464_vm8, %v852_v24, %v863_v25  ;;  %3500 = vmatprep.subr.msk.mxu0 %vm477_vm5, %v1395_v40 }
 0x473   :  { %3473 = vmatprep.mubr.msk.f32.mxu0 %vm312_vm2, %v872_v26 }
 0x474   :  { %3474 = vmatmul.mubr.msk.f32.gmra.mrb[12].mxu0 %vm312_vm2, %v873_v27 }
 0x543   :  { %v3472_v31 = vpop.f32.mrb[10].mxu0 }
 0x544   :  { %v967_v32 = vadd.f32 %v3472_v31, %v3202_v29  ;;  %v961_v33 = vpop.f32.mrb[11].mxu0 }
 0x545   :  { %v962_v34 = vadd.f32 %v3202_v29, %v961_v33 }
 0x546   :  { %v981_v36 = vmax.f32 %v967_v32, 0.0 }
 0x547   :  { %v980_v38 = vmax.f32 %v962_v34, 0.0  ;;  %v3475_v39 = vpop.f32.mrb[12].mxu0 }
 0x548   :  { %v1090_v41 = vadd.f32 %v1076_v35, %v981_v36  ;;  %v977_v42 = vadd.f32 %v3475_v39, %v3202_v29  ;;  %v971_v43 = vpop.f32.mrb[13].mxu0 }
 0x549   :  { %v1089_v44 = vadd.f32 %v1071_v37, %v980_v38  ;;  %v972_v45 = vadd.f32 %v3202_v29, %v971_v43 }
 0x54a   :  { %v1094_v47 = vmax.f32 %v1090_v41, 0.0  ;;  %v983_v48 = vmax.f32 %v977_v42, 0.0 }
 0x54b   :  { %v1093_v50 = vmax.f32 %v1089_v44, 0.0  ;;  %v982_v51 = vmax.f32 %v972_v45, 0.0 }
 0x54c   :  { %v1092_v52 = vadd.f32 %v1086_v46, %v983_v48  ;;  %1132 = vrot.lane.b32.xlu1 %v1094_v47, %s3811_s10  ;;  %v1102_v58 = vrot.slane %v1094_v47, 4  ;;  %v3225_v48 = vld [vmem:[%s3147_s25] ss:$0 sm:$0xff]  ;;  %s3161_s25 = sld [smem:[%s4335_s0 + %s3843_s22]]   ;;  %s3862_s22 = smov 49  }
 0x54d   :  { %v1091_v53 = vadd.f32 %v1081_v49, %v982_v51  ;;  %1130 = vrot.lane.b32.xlu0 %v1093_v50, %s3811_s10  ;;  %v1101_v57 = vrot.slane %v1093_v50, 4 }
 0x54e   :  { %v1096_v54 = vmax.f32 %v1092_v52, 0.0 }
 0x54f   :  { %v1095_v55 = vmax.f32 %v1091_v53, 0.0  ;;  %v1108_v0 = vsel %vm1105_vm13, %v1101_v57, %v1102_v58 }
 0x550   :  { %1136 = vrot.lane.b32.xlu1 %v1096_v54, %s3811_s10  ;;  %v1104_v56 = vrot.slane %v1096_v54, 4 }
 0x551   :  { %1134 = vrot.lane.b32.xlu0 %v1095_v55, %s3811_s10  ;;  %v1103_v59 = vrot.slane %v1095_v55, 4  ;;  %s3824_s10 = smov 15  }
 0x552   :  { %v1109_v60 = vsel %vm1105_vm13, %v1104_v56, %v1101_v57  ;;  %s3144_s7 = sld [smem:[%s4335_s0 + %s3824_s10]]  }
 0x553   :  { %v1122_v63 = vsel %vm1110_vm14, %v1109_v60, 0.0  ;;  %v1107_v2 = vsel %vm1105_vm13, %v1102_v58, %v1103_v59  ;;  %v1106_v8 = vsel %vm1105_vm13, %v1103_v59, %v1104_v56  ;;  %v1787_v58 = vld [vmem:[%s3152_s29] sm:$0xf]  ;;  %s3160_s10 = sld [smem:[%s4335_s0 + %s3838_s1]]   ;;  %s3856_s1 = smov 43  }
 0x554   :  { %v1124_v5 = vsel %vm1112_vm15, %v1107_v2, 0.0  ;;  %s3166_s29 = sld [smem:[%s4335_s0 + %s3844_s26]]  }
 0x558   :  { %v1099_v12 = vld [vmem:[%s3144_s7] sm:$0xff]  ;;  %s3164_s7 = sld [smem:[%s4335_s0 + %s3839_s4]]   ;;  %s3857_s4 = smov 44  }
 0x559   :  { %3492 = vmatprep.subr.mxu1 %v1099_v12 }
 0x55a   :  { %3493 = vmatpush3.msra.mxu1 %v1099_v12 }
 0x55b   :  { %3508 = vmatprep.subr.mxu1 %v1507_v11 }
 0x5be   :  { %v1133_v61 = vpop.permute.xlu1 %1132 }
 0x5bf   :  { %v1131_v62 = vpop.permute.xlu0 %1130  ;;  %v1143_v3 = vsel %vm464_vm8, %v1108_v0, %v1133_v61 }
 0x5c0   :  { %v1142_v1 = vsel %vm464_vm8, %v1122_v63, %v1131_v62 }
 0x5c1   :  { %3486 = vmatprep.mubr.msk.f32.mxu0 %vm312_vm2, %v1142_v1 }
 0x5c2   :  { %v1137_v4 = vpop.permute.xlu1 %1136  ;;  %3487 = vmatmul.mubr.msk.f32.vlgmr.msra.gmra.mrb[14].mxu0 %vm312_vm2, %v1143_v3 }
 0x5c3   :  { %v1135_v6 = vpop.permute.xlu0 %1134  ;;  %3501 = vmatpush3.msk.msra.mxu0 %vm477_vm5, %v1395_v40  ;;  %v1145_v10 = vsel %vm464_vm8, %v1106_v8, %v1137_v4 }
 0x5c4   :  { %v1144_v9 = vsel %vm464_vm8, %v1124_v5, %v1135_v6 }
 0x5c5   :  { %3489 = vmatprep.mubr.msk.f32.mxu0 %vm312_vm2, %v1144_v9 }
 0x5c6   :  { %3490 = vmatmul.mubr.msk.f32.gmra.mrb[16].mxu0 %vm312_vm2, %v1145_v10 }
 0x5c7   :  { %3502 = vmatprep.mubr.msk.f32.mxu0 %vm464_vm8, %v1093_v50 }
 0x5ca   :  { %3503 = vmatmul.mubr.msk.f32.vlgmr.msra.gmra.mrb[18].mxu0 %vm464_vm8, %v1094_v47 }
 0x5cb   :  { %3505 = vmatprep.mubr.msk.f32.mxu0 %vm464_vm8, %v1095_v55 }
 0x5ce   :  { %3506 = vmatmul.mubr.msk.f32.gmra.mrb[20].mxu0 %vm464_vm8, %v1096_v54 }
 0x695   :  { %v3488_v15 = vpop.f32.mrb[14].mxu0 }
 0x696   :  { %v1239_v16 = vadd.f32 %v3488_v15, %v3214_v13  ;;  %v1233_v17 = vpop.f32.mrb[15].mxu0 }
 0x697   :  { %v1234_v18 = vadd.f32 %v3214_v13, %v1233_v17 }
 0x698   :  { %v1253_v19 = vmax.f32 %v1239_v16, 0.0 }
 0x699   :  { %v1252_v20 = vmax.f32 %v1234_v18, 0.0  ;;  %v3491_v21 = vpop.f32.mrb[16].mxu0 }
 0x69a   :  { %v1257_v22 = vrot.slane %v1253_v19, 4  ;;  %v1249_v23 = vadd.f32 %v3491_v21, %v3214_v13  ;;  %1274 = vrot.lane.b32.xlu1 %v1253_v19, %s3812_s14  ;;  %v1243_v24 = vpop.f32.mrb[17].mxu0 }
 0x69b   :  { %v1256_v25 = vrot.slane %v1252_v20, 4  ;;  %v1244_v26 = vadd.f32 %v3214_v13, %v1243_v24  ;;  %1272 = vrot.lane.b32.xlu0 %v1252_v20, %s3812_s14  ;;  %v3231_v24 = vld [vmem:[%s3149_s5] ss:$0 sm:$0xff]  ;;  %s4259_s5 = sld [smem:[%s4335_s0 + %s3846_s3]]  }
 0x69c   :  { %v1255_v27 = vmax.f32 %v1249_v23, 0.0 }
 0x69d   :  { %v1254_v28 = vmax.f32 %v1244_v26, 0.0  ;;  %v3504_v29 = vpop.f32.mrb[18].mxu0  ;;  %v1262_v30 = vsel %vm1105_vm13, %v1256_v25, %v1257_v22 }
 0x69e   :  { %v1259_v31 = vrot.slane %v1255_v27, 4  ;;  %1278 = vrot.lane.b32.xlu1 %v1255_v27, %s3812_s14  ;;  %v1480_v32 = vpop.f32.mrb[19].mxu0  ;;  %v1486_v53 = vadd.f32 %v3504_v29, %v3225_v48 }
 0x69f   :  { %v1258_v33 = vrot.slane %v1254_v28, 4  ;;  %1276 = vrot.lane.b32.xlu0 %v1254_v28, %s3812_s14  ;;  %v1481_v55 = vadd.f32 %v3225_v48, %v1480_v32 }
 0x6a0   :  { %v1263_v34 = vsel %vm1105_vm13, %v1259_v31, %v1256_v25 }
 0x6a1   :  { %v3507_v35 = vpop.f32.mrb[20].mxu0  ;;  %v1260_v36 = vsel %vm1105_vm13, %v1258_v33, %v1259_v31  ;;  %v1261_v37 = vsel %vm1105_vm13, %v1257_v22, %v1258_v33  ;;  %v1264_v41 = vsel %vm1110_vm14, %v1263_v34, 0.0 }
 0x6a2   :  { %v1490_v38 = vpop.f32.mrb[21].mxu0  ;;  %v1266_v45 = vsel %vm1112_vm15, %v1261_v37, 0.0  ;;  %v1496_v0 = vadd.f32 %v3507_v35, %v3225_v48 }
 0x6a3   :  { %v1491_v3 = vadd.f32 %v3225_v48, %v1490_v38  ;;  %v1901_v48 = vld [vmem:[%s3156_s19] sm:$0xff] }
 0x70c   :  { %v1275_v39 = vpop.permute.xlu1 %1274 }
 0x70d   :  { %v1273_v40 = vpop.permute.xlu0 %1272  ;;  %v1285_v43 = vsel %vm312_vm2, %v1262_v30, %v1275_v39 }
 0x70e   :  { %v1284_v42 = vsel %vm312_vm2, %v1264_v41, %v1273_v40 }
 0x70f   :  { %3494 = vmatprep.mubr.msk.f32.mxu1 %vm323_vm4, %v1284_v42 }
 0x710   :  { %v1279_v44 = vpop.permute.xlu1 %1278  ;;  %3495 = vmatmul.mubr.msk.f32.vlgmr.msra.gmra.mrb[10].mxu1 %vm323_vm4, %v1285_v43 }
 0x711   :  { %v1277_v7 = vpop.permute.xlu0 %1276  ;;  %v1287_v47 = vsel %vm312_vm2, %v1260_v36, %v1279_v44  ;;  %3509 = vmatpush3.msra.mxu1 %v1507_v11 }
 0x712   :  { %v1286_v46 = vsel %vm312_vm2, %v1266_v45, %v1277_v7  ;;  %3526 = vmatprep.subr.msk.mxu1 %vm586_vm6, %v1787_v58 }
 0x713   :  { %3497 = vmatprep.mubr.msk.f32.mxu1 %vm323_vm4, %v1286_v46 }
 0x714   :  { %3498 = vmatmul.mubr.msk.f32.gmra.mrb[12].mxu1 %vm323_vm4, %v1287_v47 }
 0x7e3   :  { %v3496_v49 = vpop.f32.mrb[10].mxu1 }
 0x7e4   :  { %v1378_v50 = vadd.f32 %v3496_v49, %v3220_v14  ;;  %v1372_v51 = vpop.f32.mrb[11].mxu1  ;;  %v1902_v49 = vld [vmem:[%s3156_s19 + $0x8] sm:$0xff]  ;;  %s3167_s19 = sld [smem:[%s4335_s0 + %s3849_s16]]  }
 0x7e5   :  { %v1373_v52 = vadd.f32 %v3220_v14, %v1372_v51  ;;  %v3236_v51 = vld [vmem:[%s3151_s23] ss:$0 sm:$0xff]  ;;  %s3176_s23 = sld [smem:[%s4335_s0 + %s3853_s20]]  }
 0x7e6   :  { %v1392_v54 = vmax.f32 %v1378_v50, 0.0  ;;  %v3678_v50 = vpack.c.bf16 %v1902_v49, %v1901_v48 }
 0x7e7   :  { %v1391_v56 = vmax.f32 %v1373_v52, 0.0  ;;  %v3499_v57 = vpop.f32.mrb[12].mxu1  ;;  %v3241_v52 = vld [vmem:[%s3153_s27] ss:$0 sm:$0xff]  ;;  %s3169_s27 = sld [smem:[%s4335_s0 + %s3854_s24]]  }
 0x7e8   :  { %v1500_v59 = vadd.f32 %v1486_v53, %v1392_v54  ;;  %v1388_v60 = vadd.f32 %v3499_v57, %v3220_v14  ;;  %v1382_v61 = vpop.f32.mrb[13].mxu1 }
 0x7e9   :  { %v1499_v62 = vadd.f32 %v1481_v55, %v1391_v56  ;;  %v1383_v63 = vadd.f32 %v3220_v14, %v1382_v61  ;;  %v2118_v14 = vld [vmem:[%s3158_s15] sm:$0xff]  ;;  %s3165_s15 = sld [smem:[%s4335_s0 + %s3848_s9]]  }
 0x7ea   :  { %v1504_v1 = vmax.f32 %v1500_v59, 0.0  ;;  %v1394_v2 = vmax.f32 %v1388_v60, 0.0 }
 0x7eb   :  { %v1503_v4 = vmax.f32 %v1499_v62, 0.0  ;;  %v1393_v5 = vmax.f32 %v1383_v63, 0.0 }
 0x7ec   :  { %v1502_v6 = vadd.f32 %v1496_v0, %v1394_v2  ;;  %1534 = vrot.lane.b32.xlu1 %v1504_v1, %s3812_s14 }
 0x7ed   :  { %v1501_v8 = vadd.f32 %v1491_v3, %v1393_v5  ;;  %1532 = vrot.lane.b32.xlu0 %v1503_v4, %s3812_s14 }
 0x7ee   :  { %v1506_v9 = vmax.f32 %v1502_v6, 0.0 }
 0x7ef   :  { %v1505_v10 = vmax.f32 %v1501_v8, 0.0 }
 0x7f0   :  { %1538 = vrot.lane.b32.xlu1 %v1506_v9, %s3812_s14 }
 0x7f1   :  { %1536 = vrot.lane.b32.xlu0 %v1505_v10, %s3812_s14  ;;  %s3830_s14 = smov 21  }
 0x7f2   :  { %s3150_s2 = sld [smem:[%s4335_s0 + %s3830_s14]]   ;;  %s3845_s14 = smov 41  }
 0x7f8   :  { %v1509_v21 = vld [vmem:[%s3150_s2] sm:$0xff]  ;;  %v1510_v22 = vld [vmem:[%s3150_s2 + $0x8] sm:$0xff]  ;;  %s4252_s2 = sld [smem:[%s4335_s0 + %s3845_s14]]  }
 0x7f9   :  { %v3674_v23 = vpack.c.bf16 %v1510_v22, %v1509_v21 }
 0x7fb   :  { %3675 = vmatprep.subr.bf16.mxu0 %v3674_v23 }
 0x7fc   :  { %3677 = vmatpush3.bf16.msra.mxu0 %v3674_v23 }
 0x85e   :  { %v1535_v12 = vpop.permute.xlu1 %1534 }
 0x85f   :  { %v1533_v13 = vpop.permute.xlu0 %1532  ;;  %v1545_v16 = vsel %vm312_vm2, %v1503_v4, %v1535_v12 }
 0x860   :  { %v1544_v15 = vsel %vm312_vm2, 0.0, %v1533_v13 }
 0x861   :  { %3510 = vmatprep.mubr.msk.f32.mxu1 %vm323_vm4, %v1544_v15 }
 0x862   :  { %v1539_v17 = vpop.permute.xlu1 %1538  ;;  %3511 = vmatmul.mubr.msk.f32.vlgmr.msra.gmra.mrb[14].mxu1 %vm323_vm4, %v1545_v16  ;;  %v3247_v16 = vld [vmem:[%s3155_s30] ss:$0 sm:$0xff]  ;;  %s3171_s30 = sld [smem:[%s4335_s0 + %s3855_s28]]  }
 0x863   :  { %v1537_v18 = vpop.permute.xlu0 %1536  ;;  %3527 = vmatpush3.msk.msra.mxu1 %vm586_vm6, %v1787_v58  ;;  %v1547_v20 = vsel %vm312_vm2, %v1505_v10, %v1539_v17 }
 0x864   :  { %v1546_v19 = vsel %vm312_vm2, 0.0, %v1537_v18  ;;  %3679 = vmatprep.subr.bf16.mxu1 %v3678_v50 }
 0x865   :  { %3513 = vmatprep.mubr.msk.f32.mxu1 %vm323_vm4, %v1546_v19 }
 0x866   :  { %3514 = vmatmul.mubr.msk.f32.gmra.mrb[16].mxu1 %vm323_vm4, %v1547_v20 }
 0x867   :  { %3528 = vmatprep.mubr.msk.f32.mxu1 %vm312_vm2, %v1503_v4 }
 0x86a   :  { %3529 = vmatmul.mubr.msk.f32.vlgmr.msra.gmra.mrb[18].mxu1 %vm312_vm2, %v1504_v1 }
 0x86b   :  { %3531 = vmatprep.mubr.msk.f32.mxu1 %vm312_vm2, %v1505_v10  ;;  %3681 = vmatpush3.bf16.msra.mxu1 %v3678_v50 }
 0x86e   :  { %3532 = vmatmul.mubr.msk.f32.gmra.mrb[20].mxu1 %vm312_vm2, %v1506_v9  ;;  %vm2671_vm2 = vcmask 523264  }
 0x935   :  { %v3512_v25 = vpop.f32.mrb[14].mxu1 }
 0x936   :  { %v1638_v26 = vadd.f32 %v3512_v25, %v3231_v24  ;;  %v1632_v27 = vpop.f32.mrb[15].mxu1 }
 0x937   :  { %v1633_v28 = vadd.f32 %v3231_v24, %v1632_v27 }
 0x938   :  { %v1652_v29 = vmax.f32 %v1638_v26, 0.0 }
 0x939   :  { %v1651_v30 = vmax.f32 %v1633_v28, 0.0  ;;  %v3515_v31 = vpop.f32.mrb[16].mxu1 }
 0x93a   :  { %v1648_v32 = vadd.f32 %v3515_v31, %v3231_v24  ;;  %1665 = vrot.lane.b32.xlu1 %v1652_v29, %s3819_s13  ;;  %v1642_v33 = vpop.f32.mrb[17].mxu1 }
 0x93b   :  { %v1643_v34 = vadd.f32 %v3231_v24, %v1642_v33  ;;  %1663 = vrot.lane.b32.xlu0 %v1651_v30, %s3819_s13  ;;  %v2219_v33 = vld [vmem:[%s3160_s10] sm:$0xff] }
 0x93c   :  { %v1654_v35 = vmax.f32 %v1648_v32, 0.0 }
 0x93d   :  { %v1653_v36 = vmax.f32 %v1643_v34, 0.0  ;;  %v3530_v37 = vpop.f32.mrb[18].mxu1  ;;  %v2220_v34 = vld [vmem:[%s3160_s10 + $0x8] sm:$0xff]  ;;  %s3172_s10 = sld [smem:[%s4335_s0 + %s3856_s1]]  }
 0x93e   :  { %1669 = vrot.lane.b32.xlu1 %v1654_v35, %s3819_s13  ;;  %v1872_v38 = vpop.f32.mrb[19].mxu1  ;;  %v1878_v57 = vadd.f32 %v3530_v37, %v3241_v52  ;;  %v3682_v35 = vpack.c.bf16 %v2220_v34, %v2219_v33  ;;  %v2443_v37 = vld [vmem:[%s3164_s7 + $0x8] sm:$0xff]  ;;  %v2549_v33 = vld [vmem:[%s4259_s5] sm:$0xff] }
 0x93f   :  { %1667 = vrot.lane.b32.xlu0 %v1653_v36, %s3819_s13  ;;  %s3832_s13 = smov 25   ;;  %v1873_v59 = vadd.f32 %v3241_v52, %v1872_v38  ;;  %v2550_v34 = vld [vmem:[%s4259_s5 + $0x8] sm:$0xff] }
 0x940   :  { %s3154_s6 = sld [smem:[%s4335_s0 + %s3832_s13]]   ;;  %3683 = vmatprep.subr.bf16.mxu1 %v3682_v35  ;;  %s3847_s13 = smov 34  }
 0x941   :  { %v3533_v39 = vpop.f32.mrb[20].mxu1 }
 0x942   :  { %v1882_v40 = vpop.f32.mrb[21].mxu1  ;;  %v1888_v3 = vadd.f32 %v3533_v39, %v3241_v52  ;;  %v2222_v39 = vld [vmem:[%s4219_s11] sm:$0xff] }
 0x943   :  { %v1883_v5 = vadd.f32 %v3241_v52, %v1882_v40  ;;  %v2223_v40 = vld [vmem:[%s4219_s11 + $0x8] sm:$0xff] }
 0x946   :  { %v1899_v11 = vld [vmem:[%s3154_s6] sm:$0xff]  ;;  %s3163_s6 = sld [smem:[%s4335_s0 + %s3847_s13]]  }
 0x947   :  { %3534 = vmatprep.subr.mxu0 %v1899_v11 }
 0x9ac   :  { %v1666_v41 = vpop.permute.xlu1 %1665 }
 0x9ad   :  { %v1664_v42 = vpop.permute.xlu0 %1663  ;;  %v1676_v44 = vsel %vm323_vm4, %v1651_v30, %v1666_v41  ;;  %v3686_v41 = vpack.c.bf16 %v2223_v40, %v2222_v39  ;;  %v2553_v39 = vld [vmem:[%s4259_s5 + $0x20] sm:$0xff]  ;;  %v2554_v40 = vld [vmem:[%s4259_s5 + $0x28] sm:$0xff] }
 0x9ae   :  { %v1675_v43 = vsel %vm323_vm4, 0.0, %v1664_v42  ;;  %v3252_v42 = vld [vmem:[%s3157_s17] ss:$0 sm:$0xff]  ;;  %s3175_s17 = sld [smem:[%s4335_s0 + %s3859_s12]]  }
 0x9af   :  { %3520 = vmatprep.mubr.msk.f32.mxu0 %vm1685_vm0, %v1675_v43  ;;  %v3257_v43 = vld [vmem:[%s3159_s21] ss:$0 sm:$0xff]  ;;  %s3177_s21 = sld [smem:[%s4335_s0 + %s3861_s18]]  }
 0x9b0   :  { %v1670_v45 = vpop.permute.xlu1 %1669  ;;  %3521 = vmatmul.mubr.msk.f32.vlgmr.msra.gmra.mrb[22].mxu0 %vm1685_vm0, %v1676_v44 }
 0x9b1   :  { %v1668_v7 = vpop.permute.xlu0 %1667  ;;  %v1678_v47 = vsel %vm323_vm4, %v1653_v36, %v1670_v45  ;;  %3535 = vmatpush3.msra.mxu0 %v1899_v11  ;;  %v2442_v36 = vld [vmem:[%s3164_s7] sm:$0xff]  ;;  %s3173_s7 = sld [smem:[%s4335_s0 + %s3857_s4]]  }
 0x9b2   :  { %v1677_v46 = vsel %vm323_vm4, 0.0, %v1668_v7  ;;  %3552 = vmatprep.subr.mxu0 %v2118_v14  ;;  %v3694_v38 = vpack.c.bf16 %v2443_v37, %v2442_v36  ;;  %v3706_v36 = vpack.c.bf16 %v2550_v34, %v2549_v33  ;;  %v2552_v37 = vld [vmem:[%s4259_s5 + $0x18] sm:$0xff] }
 0x9b3   :  { %3523 = vmatprep.mubr.msk.f32.mxu0 %vm1685_vm0, %v1677_v46  ;;  %v2887_v33 = vld [vmem:[%s3176_s23 + $0x18] sm:$0xff] }
 0x9b4   :  { %3524 = vmatmul.mubr.msk.f32.gmra.mrb[24].mxu0 %vm1685_vm0, %v1678_v47 }
 0xa83   :  { %v3522_v53 = vpop.f32.mrb[22].mxu0 }
 0xa84   :  { %v1770_v54 = vadd.f32 %v3522_v53, %v3236_v51  ;;  %v1764_v55 = vpop.f32.mrb[23].mxu0 }
 0xa85   :  { %v1765_v56 = vadd.f32 %v3236_v51, %v1764_v55 }
 0xa86   :  { %v1784_v58 = vmax.f32 %v1770_v54, 0.0 }
 0xa87   :  { %v1783_v60 = vmax.f32 %v1765_v56, 0.0  ;;  %v3525_v61 = vpop.f32.mrb[24].mxu0 }
 0xa88   :  { %v1892_v62 = vadd.f32 %v1878_v57, %v1784_v58  ;;  %v1780_v63 = vadd.f32 %v3525_v61, %v3236_v51  ;;  %v1774_v0 = vpop.f32.mrb[25].mxu0 }
 0xa89   :  { %v1891_v1 = vadd.f32 %v1873_v59, %v1783_v60  ;;  %v1775_v2 = vadd.f32 %v3236_v51, %v1774_v0 }
 0xa8a   :  { %v1786_v4 = vmax.f32 %v1780_v63, 0.0  ;;  %v1896_v9 = vmax.f32 %v1892_v62, 0.0 }
 0xa8b   :  { %v1895_v6 = vmax.f32 %v1891_v1, 0.0  ;;  %v1785_v8 = vmax.f32 %v1775_v2, 0.0  ;;  %v2224_v1 = vld [vmem:[%s4219_s11 + $0x10] sm:$0xff]  ;;  %v2225_v2 = vld [vmem:[%s4219_s11 + $0x18] sm:$0xff]  ;;  %s3174_s11 = sld [smem:[%s4335_s0 + %s3858_s8]]  }
 0xa8c   :  { %v1894_v10 = vadd.f32 %v1888_v3, %v1786_v4  ;;  %v3690_v3 = vpack.c.bf16 %v2225_v2, %v2224_v1  ;;  %v3262_v4 = vld [vmem:[%s3161_s25] ss:$0 sm:$0xff]  ;;  %s3178_s25 = sld [smem:[%s4335_s0 + %s3862_s22]]  }
 0xa8d   :  { %v1893_v12 = vadd.f32 %v1883_v5, %v1785_v8  ;;  %3536 = vmatprep.mubr.msk.f32.mxu0 %vm323_vm4, %v1895_v6 }
 0xa8e   :  { %3537 = vmatmul.mubr.msk.f32.vlgmr.msra.gmra.mrb[26].mxu0 %vm323_vm4, %v1896_v9  ;;  %v1898_v15 = vmax.f32 %v1894_v10, 0.0 }
 0xa8f   :  { %v1897_v13 = vmax.f32 %v1893_v12, 0.0  ;;  %3553 = vmatpush3.msra.mxu0 %v2118_v14 }
 0xa90   :  { %3687 = vmatprep.subr.bf16.mxu0 %v3686_v41 }
 0xa91   :  { %3539 = vmatprep.mubr.msk.f32.mxu0 %vm323_vm4, %v1897_v13 }
 0xa92   :  { %3540 = vmatmul.mubr.msk.f32.gmra.mrb[28].mxu0 %vm323_vm4, %v1898_v15 }
 0xa93   :  { %3554 = vmatprep.mubr.msk.f32.mxu0 %vm323_vm4, %v1895_v6 }
 0xa96   :  { %3555 = vmatmul.mubr.msk.f32.vlgmr.msra.gmra.mrb[30].mxu0 %vm323_vm4, %v1896_v9 }
 0xa97   :  { %3557 = vmatprep.mubr.msk.f32.mxu0 %vm323_vm4, %v1897_v13  ;;  %3689 = vmatpush3.bf16.msra.mxu0 %v3686_v41  ;;  %v3714_v41 = vpack.c.bf16 %v2554_v40, %v2553_v39  ;;  %v2891_v39 = vld [vmem:[%s3176_s23 + $0x38] sm:$0xff] }
 0xa98   :  { %3691 = vmatprep.subr.bf16.mxu0 %v3690_v3 }
 0xa9a   :  { %3558 = vmatmul.mubr.msk.f32.gmra.mrb[32].mxu0 %vm323_vm4, %v1898_v15  ;;  %vm3124_vm4 = vcmask 123904  }
 0xa9b   :  { %3693 = vmatpush3.bf16.msra.mxu0 %v3690_v3 }
 0xb61   :  { %v3538_v17 = vpop.f32.mrb[26].mxu0 }
 0xb62   :  { %v1994_v18 = vadd.f32 %v3538_v17, %v3247_v16  ;;  %v1988_v19 = vpop.f32.mrb[27].mxu0 }
 0xb63   :  { %v1989_v20 = vadd.f32 %v3247_v16, %v1988_v19 }
 0xb64   :  { %v2008_v23 = vmax.f32 %v1994_v18, 0.0 }
 0xb65   :  { %v2007_v21 = vmax.f32 %v1989_v20, 0.0  ;;  %v3541_v22 = vpop.f32.mrb[28].mxu0 }
 0xb66   :  { %v2004_v24 = vadd.f32 %v3541_v22, %v3247_v16  ;;  %v1998_v25 = vpop.f32.mrb[29].mxu0 }
 0xb67   :  { %v1999_v26 = vadd.f32 %v3247_v16, %v1998_v25  ;;  %3546 = vmatprep.mubr.msk.f32.mxu1 %vm1685_vm0, %v2007_v21  ;;  %v2545_v25 = vld [vmem:[%s3166_s29 + $0x8] sm:$0xff] }
 0xb68   :  { %3547 = vmatmul.mubr.msk.f32.vlgmr.msra.gmra.mrb[22].mxu1 %vm1685_vm0, %v2008_v23  ;;  %v2010_v29 = vmax.f32 %v2004_v24, 0.0  ;;  %v2544_v24 = vld [vmem:[%s3166_s29] sm:$0xff] }
 0xb69   :  { %v2009_v27 = vmax.f32 %v1999_v26, 0.0  ;;  %v3556_v28 = vpop.f32.mrb[30].mxu0  ;;  %3685 = vmatpush3.bf16.msra.mxu1 %v3682_v35  ;;  %v3698_v26 = vpack.c.bf16 %v2545_v25, %v2544_v24  ;;  %v2551_v35 = vld [vmem:[%s4259_s5 + $0x10] sm:$0xff] }
 0xb6a   :  { %v2192_v30 = vpop.f32.mrb[31].mxu0  ;;  %3695 = vmatprep.subr.bf16.mxu1 %v3694_v38  ;;  %v2198_v47 = vadd.f32 %v3556_v28, %v3257_v43  ;;  %v2547_v28 = vld [vmem:[%s3166_s29 + $0x18] sm:$0xff] }
 0xb6b   :  { %3549 = vmatprep.mubr.msk.f32.mxu1 %vm1685_vm0, %v2009_v27  ;;  %v2193_v14 = vadd.f32 %v3257_v43, %v2192_v30  ;;  %3699 = vmatprep.subr.bf16.mxu0 %v3698_v26  ;;  %v2546_v27 = vld [vmem:[%s3166_s29 + $0x10] sm:$0xff]  ;;  %v2773_v30 = vld [vmem:[%s4252_s2] sm:$0xff] }
 0xb6c   :  { %3550 = vmatmul.mubr.msk.f32.gmra.mrb[24].mxu1 %vm1685_vm0, %v2010_v29  ;;  %v3702_v29 = vpack.c.bf16 %v2547_v28, %v2546_v27  ;;  %v3850_v27 = vmov 0.0|0.0   ;;  %v3852_v28 = vmov 0.0  }
 0xb6d   :  { %v3559_v31 = vpop.f32.mrb[32].mxu0 }
 0xb6e   :  { %v2202_v32 = vpop.f32.mrb[33].mxu0  ;;  %v2208_v55 = vadd.f32 %v3559_v31, %v3257_v43  ;;  %v2774_v31 = vld [vmem:[%s4252_s2 + $0x8] sm:$0xff] }
 0xb6f   :  { %v2203_v57 = vadd.f32 %v3257_v43, %v2202_v32  ;;  %v3722_v32 = vpack.c.bf16 %v2774_v31, %v2773_v30  ;;  %v3272_v43 = vld [vmem:[%s3165_s15] ss:$0 sm:$0xff]  ;;  %v2885_v30 = vld [vmem:[%s3176_s23 + $0x8] sm:$0xff]  ;;  %v2886_v31 = vld [vmem:[%s3176_s23 + $0x10] sm:$0xff] }
 0xb70   :  { %v3740_v34 = vpack.c.bf16 %v2887_v33, %v2886_v31 }
 0xc3b   :  { %v3548_v44 = vpop.f32.mrb[22].mxu1 }
 0xc3c   :  { %v2101_v45 = vadd.f32 %v3548_v44, %v3252_v42  ;;  %v2095_v7 = vpop.f32.mrb[23].mxu1 }
 0xc3d   :  { %v2096_v46 = vadd.f32 %v3252_v42, %v2095_v7 }
 0xc3e   :  { %v2115_v11 = vmax.f32 %v2101_v45, 0.0 }
 0xc3f   :  { %v2114_v48 = vmax.f32 %v2096_v46, 0.0  ;;  %v3551_v49 = vpop.f32.mrb[24].mxu1 }
 0xc40   :  { %v2212_v50 = vadd.f32 %v2198_v47, %v2115_v11  ;;  %v2111_v51 = vadd.f32 %v3551_v49, %v3252_v42  ;;  %v2105_v52 = vpop.f32.mrb[25].mxu1 }
 0xc41   :  { %v2211_v53 = vadd.f32 %v2193_v14, %v2114_v48  ;;  %v2106_v54 = vadd.f32 %v3252_v42, %v2105_v52  ;;  %v3267_v42 = vld [vmem:[%s3163_s6] ss:$0 sm:$0xff] }
 0xc42   :  { %v2117_v56 = vmax.f32 %v2111_v51, 0.0  ;;  %v2216_v60 = vmax.f32 %v2212_v50, 0.0 }
 0xc43   :  { %v2215_v58 = vmax.f32 %v2211_v53, 0.0  ;;  %v2116_v59 = vmax.f32 %v2106_v54, 0.0 }
 0xc44   :  { %v2214_v61 = vadd.f32 %v2208_v55, %v2117_v56  ;;  %v2775_v55 = vld [vmem:[%s4252_s2 + $0x10] sm:$0xff]  ;;  %v2776_v56 = vld [vmem:[%s4252_s2 + $0x18] sm:$0xff] }
 0xc45   :  { %v2213_v62 = vadd.f32 %v2203_v57, %v2116_v59  ;;  %3564 = vmatprep.mubr.msk.f32.mxu1 %vm1685_vm0, %v2215_v58 }
 0xc46   :  { %3565 = vmatmul.mubr.msk.f32.vlgmr.msra.gmra.mrb[26].mxu1 %vm1685_vm0, %v2216_v60  ;;  %v2218_v0 = vmax.f32 %v2214_v61, 0.0 }
 0xc47   :  { %v2217_v63 = vmax.f32 %v2213_v62, 0.0  ;;  %3697 = vmatpush3.bf16.msra.mxu1 %v3694_v38  ;;  %v3710_v38 = vpack.c.bf16 %v2552_v37, %v2551_v35  ;;  %v2888_v35 = vld [vmem:[%s3176_s23 + $0x20] sm:$0xff] }
 0xc48   :  { %3707 = vmatprep.subr.bf16.mxu1 %v3706_v36 }
 0xc49   :  { %3567 = vmatprep.mubr.msk.f32.mxu1 %vm1685_vm0, %v2217_v63 }
 0xc4a   :  { %3568 = vmatmul.mubr.msk.f32.gmra.mrb[28].mxu1 %vm1685_vm0, %v2218_v0 }
 0xc4b   :  { %3588 = vmatprep.mubr.msk.f32.mxu1 %vm1685_vm0, %v2215_v58 }
 0xc4e   :  { %3589 = vmatmul.mubr.msk.f32.vlgmr.msra.gmra.mrb[30].mxu1 %vm1685_vm0, %v2216_v60 }
 0xc4f   :  { %3591 = vmatprep.mubr.msk.f32.mxu1 %vm1685_vm0, %v2217_v63  ;;  %3709 = vmatpush3.bf16.msra.mxu1 %v3706_v36  ;;  %v2889_v36 = vld [vmem:[%s3176_s23 + $0x28] sm:$0xff] }
 0xc50   :  { %3711 = vmatprep.subr.bf16.mxu1 %v3710_v38  ;;  %v3743_v37 = vpack.c.bf16 %v2889_v36, %v2888_v35 }
 0xc52   :  { %3592 = vmatmul.mubr.msk.f32.gmra.mrb[32].mxu1 %vm1685_vm0, %v2218_v0  ;;  %v3726_v0 = vpack.c.bf16 %v2776_v56, %v2775_v55 }
 0xc53   :  { %3713 = vmatpush3.bf16.msra.mxu1 %v3710_v38  ;;  %v2890_v38 = vld [vmem:[%s3176_s23 + $0x30] sm:$0xff] }
 0xc54   :  { %3715 = vmatprep.subr.bf16.mxu1 %v3714_v41  ;;  %v3746_v40 = vpack.c.bf16 %v2891_v39, %v2890_v38 }
 0xc57   :  { %3717 = vmatpush3.bf16.msra.mxu1 %v3714_v41  ;;  %v3282_v41 = vld [vmem:[%s3169_s27] ss:$0 sm:$0xff] }
 0xd19   :  { %v3566_v5 = vpop.f32.mrb[26].mxu1 }
 0xd1a   :  { %v2317_v6 = vadd.f32 %v3566_v5, %v3262_v4  ;;  %v2311_v8 = vpop.f32.mrb[27].mxu1  ;;  %v2556_v5 = vld [vmem:[%s4259_s5 + $0x38] sm:$0xff] }
 0xd1b   :  { %v2312_v9 = vadd.f32 %v3262_v4, %v2311_v8  ;;  %v3277_v8 = vld [vmem:[%s3167_s19] ss:$0 sm:$0xff] }
 0xd1c   :  { %v2331_v13 = vmax.f32 %v2317_v6, 0.0 }
 0xd1d   :  { %v2330_v10 = vmax.f32 %v2312_v9, 0.0  ;;  %v3569_v12 = vpop.f32.mrb[28].mxu1 }
 0xd1e   :  { %v2327_v15 = vadd.f32 %v3569_v12, %v3262_v4  ;;  %v2321_v16 = vpop.f32.mrb[29].mxu1 }
 0xd1f   :  { %v2322_v17 = vadd.f32 %v3262_v4, %v2321_v16  ;;  %3578 = vmatprep.mubr.msk.f32.mxu0 %vm2340_vm1, %v2330_v10  ;;  %v2555_v4 = vld [vmem:[%s4259_s5 + $0x30] sm:$0xff] }
 0xd20   :  { %3579 = vmatmul.mubr.msk.f32.vlgmr.msra.gmra.mrb[34].mxu0 %vm2340_vm1, %v2331_v13  ;;  %v2333_v20 = vmax.f32 %v2327_v15, 0.0  ;;  %v3718_v6 = vpack.c.bf16 %v2556_v5, %v2555_v4 }
 0xd21   :  { %v2332_v18 = vmax.f32 %v2322_v17, 0.0  ;;  %v3590_v19 = vpop.f32.mrb[30].mxu1  ;;  %3701 = vmatpush3.bf16.msra.mxu0 %v3698_v26 }
 0xd22   :  { %v2517_v21 = vpop.f32.mrb[31].mxu1  ;;  %3703 = vmatprep.subr.bf16.mxu0 %v3702_v29  ;;  %v2523_v47 = vadd.f32 %v3590_v19, %v3272_v43  ;;  %3719 = vmatprep.subr.bf16.mxu1 %v3718_v6 }
 0xd23   :  { %3581 = vmatprep.mubr.msk.f32.mxu0 %vm2340_vm1, %v2332_v18  ;;  %v2518_v14 = vadd.f32 %v3272_v43, %v2517_v21  ;;  %3721 = vmatpush3.bf16.msra.mxu1 %v3718_v6 }
 0xd24   :  { %3582 = vmatmul.mubr.msk.f32.gmra.mrb[36].mxu0 %vm2340_vm1, %v2333_v20  ;;  %3736 = vmatprep.subr.bf16.mxu1 %v3850_v27 }
 0xd25   :  { %v3593_v22 = vpop.f32.mrb[32].mxu1  ;;  %3705 = vmatpush3.bf16.msra.mxu0 %v3702_v29  ;;  %v2884_v29 = vld [vmem:[%s3176_s23] sm:$0xff] }
 0xd26   :  { %v2527_v23 = vpop.f32.mrb[33].mxu1  ;;  %3723 = vmatprep.subr.bf16.mxu0 %v3722_v32  ;;  %v2533_v57 = vadd.f32 %v3593_v22, %v3272_v43 }
 0xd27   :  { %v2528_v59 = vadd.f32 %v3272_v43, %v2527_v23 }
 0xdf3   :  { %v3580_v44 = vpop.f32.mrb[34].mxu0 }
 0xdf4   :  { %v2425_v45 = vadd.f32 %v3580_v44, %v3267_v42  ;;  %v2419_v7 = vpop.f32.mrb[35].mxu0 }
 0xdf5   :  { %v2420_v46 = vadd.f32 %v3267_v42, %v2419_v7 }
 0xdf6   :  { %v2439_v11 = vmax.f32 %v2425_v45, 0.0 }
 0xdf7   :  { %v2438_v48 = vmax.f32 %v2420_v46, 0.0  ;;  %v3583_v49 = vpop.f32.mrb[36].mxu0 }
 0xdf8   :  { %v2537_v50 = vadd.f32 %v2523_v47, %v2439_v11  ;;  %v2435_v51 = vadd.f32 %v3583_v49, %v3267_v42  ;;  %v2429_v52 = vpop.f32.mrb[37].mxu0 }
 0xdf9   :  { %v2536_v53 = vadd.f32 %v2518_v14, %v2438_v48  ;;  %v2430_v54 = vadd.f32 %v3267_v42, %v2429_v52  ;;  %v3287_v42 = vld [vmem:[%s3171_s30] ss:$0 sm:$0xff] }
 0xdfa   :  { %v2441_v58 = vmax.f32 %v2435_v51, 0.0  ;;  %v2541_v62 = vmax.f32 %v2537_v50, 0.0 }
 0xdfb   :  { %v2540_v60 = vmax.f32 %v2536_v53, 0.0  ;;  %v2440_v61 = vmax.f32 %v2430_v54, 0.0 }
 0xdfc   :  { %v2539_v63 = vadd.f32 %v2533_v57, %v2441_v58 }
 0xdfd   :  { %v2538_v1 = vadd.f32 %v2528_v59, %v2440_v61  ;;  %3602 = vmatprep.mubr.msk.f32.mxu0 %vm2340_vm1, %v2540_v60 }
 0xdfe   :  { %3603 = vmatmul.mubr.msk.f32.vlgmr.msra.gmra.mrb[38].mxu0 %vm2340_vm1, %v2541_v62  ;;  %v2543_v3 = vmax.f32 %v2539_v63, 0.0 }
 0xdff   :  { %v2542_v2 = vmax.f32 %v2538_v1, 0.0  ;;  %3725 = vmatpush3.bf16.msra.mxu0 %v3722_v32  ;;  %v3737_v32 = vpack.c.bf16 %v2885_v30, %v2884_v29 }
 0xe00   :  { %3727 = vmatprep.subr.bf16.mxu0 %v3726_v0 }
 0xe01   :  { %3605 = vmatprep.mubr.msk.f32.mxu0 %vm2340_vm1, %v2542_v2 }
 0xe02   :  { %3606 = vmatmul.mubr.msk.f32.gmra.mrb[40].mxu0 %vm2340_vm1, %v2543_v3 }
 0xe03   :  { %3729 = vmatpush3.bf16.msra.mxu0 %v3726_v0  ;;  %3638 = vmatprep.mubr.msk.f32.mxu0 %vm2340_vm1, %v2540_v60 }
 0xe04   :  { %3730 = vmatprep.subr.bf16.mxu0 %v3850_v27 }
 0xe06   :  { %3639 = vmatmul.mubr.msk.f32.vlgmr.msra.gmra.mrb[42].mxu0 %vm2340_vm1, %v2541_v62 }
 0xe07   :  { %3641 = vmatprep.mubr.msk.f32.mxu0 %vm2340_vm1, %v2542_v2 }
 0xe0a   :  { %3642 = vmatmul.mubr.msk.f32.gmra.mrb[44].mxu0 %vm2340_vm1, %v2543_v3 }
 0xe0b   :  { %3652 = vmatprep.mubr.msk.f32.mxu0 %vm3851_vm3, %v3852_v28 }
 0xed1   :  { %v3604_v9 = vpop.f32.mrb[38].mxu0 }
 0xed2   :  { %v2648_v10 = vadd.f32 %v3604_v9, %v3277_v8  ;;  %v2642_v12 = vpop.f32.mrb[39].mxu0 }
 0xed3   :  { %v2643_v13 = vadd.f32 %v3277_v8, %v2642_v12 }
 0xed4   :  { %v2662_v17 = vmax.f32 %v2648_v10, 0.0 }
 0xed5   :  { %v2661_v15 = vmax.f32 %v2643_v13, 0.0  ;;  %v3607_v16 = vpop.f32.mrb[40].mxu0 }
 0xed6   :  { %v2658_v18 = vadd.f32 %v3607_v16, %v3277_v8  ;;  %v2652_v19 = vpop.f32.mrb[41].mxu0 }
 0xed7   :  { %v2653_v20 = vadd.f32 %v3277_v8, %v2652_v19  ;;  %3624 = vmatprep.mubr.msk.f32.mxu1 %vm2671_vm2, %v2661_v15 }
 0xed8   :  { %3625 = vmatmul.mubr.msk.f32.vlgmr.msra.gmra.mrb[34].mxu1 %vm2671_vm2, %v2662_v17  ;;  %v2664_v23 = vmax.f32 %v2658_v18, 0.0 }
 0xed9   :  { %v2663_v21 = vmax.f32 %v2653_v20, 0.0  ;;  %v3640_v22 = vpop.f32.mrb[42].mxu0  ;;  %3738 = vmatpush3.bf16.msra.mxu1 %v3737_v32 }
 0xeda   :  { %v2850_v24 = vpop.f32.mrb[43].mxu0  ;;  %3739 = vmatprep.subr.bf16.mxu1 %v3850_v27  ;;  %v2856_v46 = vadd.f32 %v3640_v22, %v3287_v42 }
 0xedb   :  { %3627 = vmatprep.mubr.msk.f32.mxu1 %vm2671_vm2, %v2663_v21  ;;  %v2851_v11 = vadd.f32 %v3287_v42, %v2850_v24 }
 0xedc   :  { %3628 = vmatmul.mubr.msk.f32.gmra.mrb[36].mxu1 %vm2671_vm2, %v2664_v23 }
 0xedd   :  { %v3643_v25 = vpop.f32.mrb[44].mxu0  ;;  %3671 = vmatprep.mubr.msk.f32.mxu1 %vm3851_vm3, %v3852_v28  ;;  %3741 = vmatpush3.bf16.msra.mxu1 %v3740_v34 }
 0xede   :  { %v2860_v26 = vpop.f32.mrb[45].mxu0  ;;  %3742 = vmatprep.subr.bf16.mxu1 %v3850_v27  ;;  %v2866_v54 = vadd.f32 %v3643_v25, %v3287_v42 }
 0xedf   :  { %v2861_v57 = vadd.f32 %v3287_v42, %v2860_v26  ;;  %v3292_v42 = vld [vmem:[%s3172_s10] ss:$0 sm:$0xff] }
 0xee1   :  { %3744 = vmatpush3.bf16.msra.mxu1 %v3743_v37 }
 0xee2   :  { %3745 = vmatprep.subr.bf16.mxu1 %v3850_v27 }
 0xee5   :  { %3747 = vmatpush3.bf16.msra.mxu1 %v3746_v40 }
 0xfab   :  { %v3626_v43 = vpop.f32.mrb[34].mxu1 }
 0xfac   :  { %v2756_v44 = vadd.f32 %v3626_v43, %v3282_v41  ;;  %v2750_v45 = vpop.f32.mrb[35].mxu1 }
 0xfad   :  { %v2751_v7 = vadd.f32 %v3282_v41, %v2750_v45 }
 0xfae   :  { %v2770_v47 = vmax.f32 %v2756_v44, 0.0 }
 0xfaf   :  { %v2769_v14 = vmax.f32 %v2751_v7, 0.0  ;;  %v3629_v48 = vpop.f32.mrb[36].mxu1 }
 0xfb0   :  { %v2870_v49 = vadd.f32 %v2856_v46, %v2770_v47  ;;  %v2766_v50 = vadd.f32 %v3629_v48, %v3282_v41  ;;  %v2760_v51 = vpop.f32.mrb[37].mxu1  ;;  %v3293_v46 = vld [vmem:[%s3173_s7] ss:$0 sm:$0xff] }
 0xfb1   :  { %v2869_v52 = vadd.f32 %v2851_v11, %v2769_v14  ;;  %v2761_v53 = vadd.f32 %v3282_v41, %v2760_v51 }
 0xfb2   :  { %v2874_v55 = vmax.f32 %v2870_v49, 0.0  ;;  %v2772_v56 = vmax.f32 %v2766_v50, 0.0  ;;  %v2879_v50 = vld [vmem:[%s3174_s11] sm:$0xff] }
 0xfb3   :  { %v2873_v58 = vmax.f32 %v2869_v52, 0.0  ;;  %v2771_v59 = vmax.f32 %v2761_v53, 0.0 }
 0xfb4   :  { %v2894_v60 = vsel %vm2671_vm2, %v2874_v55, 0.0  ;;  %v2872_v61 = vadd.f32 %v2866_v54, %v2772_v56  ;;  %v2880_v54 = vld [vmem:[%s3174_s11 + $0x8] sm:$0xff]  ;;  %v2882_v56 = vld [vmem:[%s3174_s11 + $0x18] sm:$0xff] }
 0xfb5   :  { %v2893_v62 = vsel %vm2671_vm2, %v2873_v58, 0.0  ;;  %v2871_v63 = vadd.f32 %v2861_v57, %v2771_v59 }
 0xfb6   :  { %v2895_v0 = vadd.f32 %v2894_v60, %v2893_v62  ;;  %v2876_v1 = vmax.f32 %v2872_v61, 0.0 }
 0xfb7   :  { %v2875_v2 = vmax.f32 %v2871_v63, 0.0 }
 0xfb8   :  { %v2898_v5 = vsel %vm2671_vm2, %v2876_v1, 0.0 }
 0xfb9   :  { %v2896_v3 = vsel %vm2671_vm2, %v2875_v2, 0.0 }
 0xfba   :  { %v2897_v4 = vadd.f32 %v2896_v3, %v2895_v0  ;;  %v2883_v3 = vld [vmem:[%s3175_s17] sm:$0x3] }
 0xfbc   :  { %v2899_v6 = vadd.f32 %v2898_v5, %v2897_v4  ;;  %v3860_v4 = vmov 0   ;;  %v110_v5 = vstv %s3177_s21 }
 0xfbd   :  { %3803 = vset.pattern.permute.xlu0 %v3860_v4  ;;  %111 = vst [vmem:[#allocation5] sm:$0x1] %v110_v5 }
 0xfbe   :  { %v2900_v8 = vrot.slane %v2899_v6, 4 }
 0xfc0   :  { %v2901_v9 = vadd.f32 %v2900_v8, %v2899_v6 }
 0xfc2   :  { %v2902_v10 = vrot.slane %v2901_v9, 2 }
 0xfc4   :  { %v2903_v12 = vadd.f32 %v2902_v10, %v2901_v9  ;;  %v3295_v6 = vld [vmem:[#allocation5] ss:$0 sm:$0xff] }
 0xfc5   :  { %3043 = vperm.xlu0 %3803, %v3295_v6  }
 0xfc6   :  { %v2904_v13 = vrot.slane %v2903_v12, 1 }
 0xfc8   :  { %v2905_v15 = vadd.f32 %v2904_v13, %v2903_v12 }
 0xfca   :  { %v2907_v16 = vmul.f32 0.03125, %v2905_v15 }
 0xfcc   :  { %v2908_v17 = vsub.f32 %v2873_v58, %v2907_v16  ;;  %v2909_v18 = vsub.f32 %v2874_v55, %v2907_v16  ;;  %v2910_v19 = vsub.f32 %v2875_v2, %v2907_v16  ;;  %v2911_v20 = vsub.f32 %v2876_v1, %v2907_v16  ;;  %v2881_v55 = vld [vmem:[%s3174_s11 + $0x10] sm:$0xff] }
 0xfce   :  { %v2912_v21 = vmul.f32 %v2908_v17, %v2908_v17  ;;  %v2913_v22 = vmul.f32 %v2909_v18, %v2909_v18  ;;  %v2914_v23 = vmul.f32 %v2910_v19, %v2910_v19  ;;  %v2915_v24 = vmul.f32 %v2911_v20, %v2911_v20 }
 0xfd0   :  { %v2916_v25 = vsel %vm2671_vm2, %v2912_v21, 0.0  ;;  %v2917_v26 = vsel %vm2671_vm2, %v2913_v22, 0.0  ;;  %v2919_v29 = vsel %vm2671_vm2, %v2914_v23, 0.0  ;;  %v2921_v31 = vsel %vm2671_vm2, %v2915_v24, 0.0 }
 0xfd1   :  { %v2918_v28 = vadd.f32 %v2917_v26, %v2916_v25 }
 0xfd3   :  { %v2920_v30 = vadd.f32 %v2919_v29, %v2918_v28 }
 0xfd5   :  { %v2922_v32 = vadd.f32 %v2921_v31, %v2920_v30 }
 0xfd7   :  { %v2923_v33 = vrot.slane %v2922_v32, 4 }
 0xfd9   :  { %v2924_v34 = vadd.f32 %v2923_v33, %v2922_v32 }
 0xfdb   :  { %v2925_v35 = vrot.slane %v2924_v34, 2 }
 0xfdd   :  { %v2926_v36 = vadd.f32 %v2925_v35, %v2924_v34 }
 0xfdf   :  { %v2927_v37 = vrot.slane %v2926_v36, 1 }
 0xfe1   :  { %v2928_v38 = vadd.f32 %v2927_v37, %v2926_v36 }
 0xfe3   :  { %v2929_v39 = vmul.f32 0.03125, %v2928_v38 }
 0xfe5   :  { %v2930_v40 = vadd.f32 1e-05, %v2929_v39 }
 0xfe7   :  { %3804 = vrsqrt.f32 %v2930_v40 }
 0xff1   :  { %v3805_v41 = vpop.eup %3804 }
 0xff2   :  { %v2934_v43 = vmul.f32 %v3805_v41, %v2910_v19  ;;  %v2932_v44 = vmul.f32 %v3805_v41, %v2908_v17  ;;  %v2933_v45 = vmul.f32 %v3805_v41, %v2909_v18  ;;  %v2935_v7 = vmul.f32 %v3805_v41, %v2911_v20 }
 0xff4   :  { %v2944_v47 = vmul.f32 %v3292_v42, %v2934_v43  ;;  %v2942_v11 = vmul.f32 %v3292_v42, %v2932_v44  ;;  %v2943_v14 = vmul.f32 %v3292_v42, %v2933_v45  ;;  %v2945_v48 = vmul.f32 %v3292_v42, %v2935_v7 }
 0xff6   :  { %v2954_v49 = vadd.f32 %v3293_v46, %v2944_v47  ;;  %v2952_v51 = vadd.f32 %v3293_v46, %v2942_v11  ;;  %v2953_v52 = vadd.f32 %v3293_v46, %v2943_v14  ;;  %v2955_v53 = vadd.f32 %v3293_v46, %v2945_v48 }
 0xff8   :  { %v2956_v57 = vmax.f32 %v2952_v51, 0.0  ;;  %v2957_v58 = vmax.f32 %v2953_v52, 0.0  ;;  %v2958_v59 = vmax.f32 %v2954_v49, 0.0  ;;  %v2959_v60 = vmax.f32 %v2955_v53, 0.0 }
 0xffa   :  { %v2960_v61 = vmul.f32 %v2956_v57, %v2879_v50  ;;  %v2961_v62 = vmul.f32 %v2957_v58, %v2880_v54  ;;  %v2962_v63 = vmul.f32 %v2958_v59, %v2881_v55  ;;  %v2963_v0 = vmul.f32 %v2959_v60, %v2882_v56 }
 0xffc   :  { %v3731_v1 = vpack.c.bf16 %v2961_v62, %v2960_v61  ;;  %v3734_v2 = vpack.c.bf16 %v2963_v0, %v2962_v63 }
 0xffe   :  { %3732 = vmatpush3.bf16.msra.mxu0 %v3731_v1 }
 0xfff   :  { %3733 = vmatprep.subr.bf16.mxu0 %v3850_v27 }
0x1002   :  { %3735 = vmatpush3.bf16.msra.mxu0 %v3734_v2 }
0x1005   :  { %3653 = vmatmul.mubr.msk.f32.vlgmr.msra.gmra.mrb[46].mxu0 %vm2340_vm1, %v2883_v3 }
0x1044   :  { %v3044_v27 = vpop.permute.xlu0 %3043 }
0x10d8   :  { %v3033_v8 = vpop.f32.mrb[46].mxu0 }
0x10d9   :  { %v3654_v9 = vpop.f32.mrb[47].mxu0  ;;  %3672 = vmatmul.mubr.msk.f32.vlgmr.msra.gmra.mrb[38].mxu1 %vm2671_vm2, %v3033_v8 }
0x11ac   :  { %v3115_v10 = vpop.f32.mrb[38].mxu1 }
0x11ad   :  { %v3116_v12 = vadd.f32 %v3115_v10, %v3044_v27  ;;  %v3673_v13 = vpop.f32.mrb[39].mxu1 }
0x11af   :  { %v3119_v15 = vsub.f32 0.0, %v3116_v12 }
0x11b1   :  { %v3120_v16 = vmul.f32 1.442695, %v3119_v15 }
0x11b3   :  { %3806 = vpow2.f32 %v3120_v16 }
0x11bd   :  { %v3807_v17 = vpop.eup %3806 }
0x11be   :  { %v3122_v18 = vadd.f32 1.0, %v3807_v17 }
0x11c0   :  { %3808 = vrcp.f32 %v3122_v18 }
0x11ca   :  { %v3809_v19 = vpop.eup %3808 }
0x11cb   :  { %3125 = vst.msk [vmem:[%s3178_s25] sm:$0x3] %vm3124_vm4, %v3809_v19 }

</bundles_post_ra>
